<compile_context>
chip_gen: v7x
topology: tpu7x:2x2x1
jax: 0.10.0
libtpu: 0.0.40
codegen_flags: <defaults>
</compile_context>

<pallas_src>
import jax
import jax.numpy as jnp
from jax.experimental import pallas as pl
from jax.experimental.pallas import tpu as pltpu


def glove_kernel(i_idx_ref, j_idx_ref,   # (TB, 1) int32 index columns
                 wi_ref, wj_ref,         # (V, D) embedding tables, VMEM-resident
                 bias_ref,               # (1, TB) pre-added bi+bj bias block
                 out_ref):               # (1, TB) lane-dense output block
    V, D = wi_ref.shape
    tb = out_ref.shape[1]

    idx_i = i_idx_ref[...]               # (TB, 1) int32
    idx_j = j_idx_ref[...]               # (TB, 1) int32

    # One-hot gather on the MXU: onehot[t, v] = (idx[t] == v).
    iota_v = jax.lax.broadcasted_iota(jnp.int32, (tb, V), 1)
    onehot_i = jnp.where(iota_v == idx_i, 1.0, 0.0).astype(jnp.float32)   # (TB, V)
    onehot_j = jnp.where(iota_v == idx_j, 1.0, 0.0).astype(jnp.float32)   # (TB, V)

    rows_i = jax.lax.dot_general(
        onehot_i, wi_ref[...], (((1,), (0,)), ((), ())),
        preferred_element_type=jnp.float32)                               # (TB, D)
    rows_j = jax.lax.dot_general(
        onehot_j, wj_ref[...], (((1,), (0,)), ((), ())),
        preferred_element_type=jnp.float32)                               # (TB, D)

    prod = rows_i * rows_j                                                # (TB, D)

    # Row-reduce over D as a ones-vector contraction -> already lane-dense (1, TB).
    ones = jnp.ones((1, D), jnp.float32)
    row_dots = jax.lax.dot_general(
        ones, prod, (((1,), (1,)), ((), ())),
        preferred_element_type=jnp.float32)                               # (1, TB)

    out_ref[...] = row_dots + bias_ref[...]


def _round_up(x, m):
    return ((x + m - 1) // m) * m


def glove_forward(i_indices, j_indices, wi_w, wj_w, bi_w, bj_w, *, tb=512):
    """Pallas implementation of GloveModel.forward.

    i_indices, j_indices: int [B]
    wi_w, wj_w          : float32 [V, D]
    bi_w, bj_w          : float32 [V, 1]
    returns             : float32 [B]
    """
    B = int(i_indices.shape[0])
    V, D = wi_w.shape

    wi_w = jnp.asarray(wi_w, jnp.float32)
    wj_w = jnp.asarray(wj_w, jnp.float32)

    # Pad the embedding dim to a multiple of 128; zero columns don't change the dot.
    if D % 128 != 0:
        pad_d = 128 - D % 128
        wi_w = jnp.pad(wi_w, ((0, 0), (0, pad_d)))
        wj_w = jnp.pad(wj_w, ((0, 0), (0, pad_d)))
        D += pad_d

    # Batch tile: lane-aligned (multiple of 128), no bigger than the (padded) batch.
    tb = max(128, min(tb, _round_up(B, 128)))
    tb = _round_up(tb, 128)
    Bp = _round_up(B, tb)
    nb = Bp // tb

    i_idx = jnp.asarray(i_indices, jnp.int32)
    j_idx = jnp.asarray(j_indices, jnp.int32)
    if Bp != B:
        # Padded rows gather row 0 (harmless) and are sliced off at the end.
        i_idx = jnp.pad(i_idx, (0, Bp - B))
        j_idx = jnp.pad(j_idx, (0, Bp - B))

    # Column layout -> in-kernel lane-broadcast against the V-iota.
    i_col = i_idx.reshape(Bp, 1)
    j_col = j_idx.reshape(Bp, 1)

    # Biases: gathered AND pre-added in the wrapper; fed as lane-dense (nb, tb) blocks.
    bias_g = (jnp.take(bi_w[:, 0], i_idx) + jnp.take(bj_w[:, 0], j_idx)
              ).astype(jnp.float32).reshape(nb, tb)

    # Advisory cost estimate: actual MXU/VPU work + all I/O bytes.
    cost = pl.CostEstimate(
        flops=2 * 2 * Bp * V * D        # two one-hot gather matmuls
        + Bp * D                        # elementwise product
        + 2 * Bp * D,                   # ones-vector reduce
        transcendentals=0,
        bytes_accessed=int(2 * V * D * 4     # wi + wj tables (fetched once)
                           + 2 * Bp * 4      # index columns
                           + Bp * 4          # pre-added bias
                           + Bp * 4),        # output
    )

    def vmem_limit(table_bufs):
        tables = table_bufs * 2 * V * D * 4
        io = 2 * (2 * tb * 128 * 4 + 2 * tb * 4)         # per-step blocks, double-buffered
        tmp = 2 * tb * max(V, 128) * 4 + 3 * tb * D * 4  # one-hots + rows_i/rows_j/prod
        return tables + io + tmp + (16 << 20)            # + headroom for Mosaic scratch

    def build(table_pipeline_mode, table_bufs):
        def table_spec():
            kwargs = {}
            if table_pipeline_mode is not None:
                kwargs["pipeline_mode"] = table_pipeline_mode
            return pl.BlockSpec((V, D), lambda b: (0, 0), **kwargs)

        return pl.pallas_call(
            glove_kernel,
            out_shape=jax.ShapeDtypeStruct((nb, tb), jnp.float32),
            grid=(nb,),
            in_specs=[
                pl.BlockSpec((tb, 1), lambda b: (b, 0)),   # i index column block
                pl.BlockSpec((tb, 1), lambda b: (b, 0)),   # j index column block
                table_spec(),                              # wi table (VMEM-resident)
                table_spec(),                              # wj table (VMEM-resident)
                pl.BlockSpec((1, tb), lambda b: (b, 0)),   # pre-added bias block
            ],
            out_specs=pl.BlockSpec((1, tb), lambda b: (b, 0)),
            compiler_params=pltpu.CompilerParams(
                # "arbitrary": avoid duplicating the full-table fetch across both
                # v7x TensorCores when the kernel is table-fetch bound.
                dimension_semantics=("arbitrary",),
                vmem_limit_bytes=vmem_limit(table_bufs),
            ),
            cost_estimate=cost,
        )

    args = (i_col, j_col, wi_w, wj_w, bias_g)
    try:
        # Constant index_map -> tables never re-fetch; single-buffer them to halve
        # their VMEM footprint (biggest win under v7x's 64 MiB budget).
        out = build(pl.Buffered(1), 1)(*args)
    except Exception:
        # Fallback if this JAX build rejects buffer_count=1: default double-buffering
        # is functionally identical, just uses 2x table VMEM.
        out = build(None, 2)(*args)

    return out.reshape(-1)[:B]


def init_glove_params(key, num_embeddings, embedding_dim):
    """Matches GloveModel.__init__: wi/wj ~ U(-1, 1), bi/bj = 0."""
    k_wi, k_wj = jax.random.split(key)
    wi_w = jax.random.uniform(
        k_wi, (num_embeddings, embedding_dim), jnp.float32, minval=-1.0, maxval=1.0)
    wj_w = jax.random.uniform(
        k_wj, (num_embeddings, embedding_dim), jnp.float32, minval=-1.0, maxval=1.0)
    bi_w = jnp.zeros((num_embeddings, 1), jnp.float32)
    bj_w = jnp.zeros((num_embeddings, 1), jnp.float32)
    return wi_w, wj_w, bi_w, bj_w


if __name__ == "__main__":
    V = 64     # num_embeddings
    D = 128    # embedding_dim
    B = 200    # batch of (i, j) index pairs (not a multiple of the tile -> tests padding)

    key = jax.random.PRNGKey(0)
    k_params, k_i, k_j = jax.random.split(key, 3)

    wi_w, wj_w, bi_w, bj_w = init_glove_params(k_params, V, D)
    # Make biases nonzero so the bias path is actually tested.
    bi_w = bi_w + 0.01 * jnp.arange(V, dtype=jnp.float32)[:, None]
    bj_w = bj_w - 0.02 * jnp.arange(V, dtype=jnp.float32)[:, None]

    i_indices = jax.random.randint(k_i, (B,), 0, V, dtype=jnp.int32)
    j_indices = jax.random.randint(k_j, (B,), 0, V, dtype=jnp.int32)

    x = glove_forward(i_indices, j_indices, wi_w, wj_w, bi_w, bj_w)
    x = jax.block_until_ready(x)

    # Pure-JAX reference of the PyTorch forward semantics.
    w_i = wi_w[i_indices]
    w_j = wj_w[j_indices]
    b_i = bi_w[i_indices][:, 0]
    b_j = bj_w[j_indices][:, 0]
    ref = jnp.sum(w_i * w_j, axis=1) + b_i + b_j

    assert x.shape == (B,)
    assert jnp.allclose(x, ref, atol=1e-5, rtol=1e-5)

    print("KERNEL_OK")
</pallas_src>

<mosaic_0001>
module attributes {stable_mosaic.version = 11 : i64} {
  func.func @glove_kernel(%arg0: i32, %arg1: memref<256x1xi32, #tpu.memory_space<vmem>>, %arg2: memref<256x1xi32, #tpu.memory_space<vmem>>, %arg3: memref<64x128xf32, #tpu.memory_space<vmem>>, %arg4: memref<64x128xf32, #tpu.memory_space<vmem>>, %arg5: memref<1x256xf32, #tpu.memory_space<vmem>>, %arg6: memref<1x256xf32, #tpu.memory_space<vmem>>) attributes {dimension_semantics = [#tpu.dimension_semantics<arbitrary>], iteration_bounds = array<i64: 1>, scalar_prefetch = 0 : i64, scratch_operands = 0 : i64, tpu.core_type = #tpu.core_type<tc>, window_params = [{transform_indices = @transform_0, window_bounds = array<i64: 256, 1>}, {transform_indices = @transform_1, window_bounds = array<i64: 256, 1>}, {pipeline_mode = #tpu.pipeline_mode<synchronous>, transform_indices = @transform_2, window_bounds = array<i64: 64, 128>}, {pipeline_mode = #tpu.pipeline_mode<synchronous>, transform_indices = @transform_3, window_bounds = array<i64: 64, 128>}, {transform_indices = @transform_4, window_bounds = array<i64: 1, 256>}, {transform_indices = @transform_5, window_bounds = array<i64: 1, 256>}]} {
    %c0 = arith.constant 0 : index
    %c0_0 = arith.constant 0 : index
    %0 = vector.load %arg1[%c0, %c0_0] : memref<256x1xi32, #tpu.memory_space<vmem>>, vector<256x1xi32>
    %c0_1 = arith.constant 0 : index
    %c0_2 = arith.constant 0 : index
    %1 = vector.load %arg2[%c0_1, %c0_2] : memref<256x1xi32, #tpu.memory_space<vmem>>, vector<256x1xi32>
    %2 = tpu.iota {dimensions = array<i32: 1>} : vector<256x64xi32>
    %3 = vector.broadcast %0 : vector<256x1xi32> to vector<256x64xi32>
    %4 = arith.cmpi eq, %2, %3 : vector<256x64xi32>
    %cst = arith.constant 1.000000e+00 : f32
    %cst_3 = arith.constant 0.000000e+00 : f32
    %5 = vector.broadcast %cst : f32 to vector<256x64xf32>
    %6 = vector.broadcast %cst_3 : f32 to vector<256x64xf32>
    %7 = arith.select %4, %5, %6 : vector<256x64xi1>, vector<256x64xf32>
    %8 = vector.broadcast %1 : vector<256x1xi32> to vector<256x64xi32>
    %9 = arith.cmpi eq, %2, %8 : vector<256x64xi32>
    %cst_4 = arith.constant 1.000000e+00 : f32
    %cst_5 = arith.constant 0.000000e+00 : f32
    %10 = vector.broadcast %cst_4 : f32 to vector<256x64xf32>
    %11 = vector.broadcast %cst_5 : f32 to vector<256x64xf32>
    %12 = arith.select %9, %10, %11 : vector<256x64xi1>, vector<256x64xf32>
    %c0_6 = arith.constant 0 : index
    %c0_7 = arith.constant 0 : index
    %13 = vector.load %arg3[%c0_6, %c0_7] : memref<64x128xf32, #tpu.memory_space<vmem>>, vector<64x128xf32>
    %cst_8 = arith.constant dense<0.000000e+00> : vector<256x128xf32>
    %14 = tpu.matmul %7, %13, %cst_8 {dimension_numbers = #tpu.dot_dimension_numbers<[1], [0], [0], [1], [0, 0, 1, 1], [], []>} : vector<256x64xf32>, vector<64x128xf32>, vector<256x128xf32> -> vector<256x128xf32>
    %c0_9 = arith.constant 0 : index
    %c0_10 = arith.constant 0 : index
    %15 = vector.load %arg4[%c0_9, %c0_10] : memref<64x128xf32, #tpu.memory_space<vmem>>, vector<64x128xf32>
    %cst_11 = arith.constant dense<0.000000e+00> : vector<256x128xf32>
    %16 = tpu.matmul %12, %15, %cst_11 {dimension_numbers = #tpu.dot_dimension_numbers<[1], [0], [0], [1], [0, 0, 1, 1], [], []>} : vector<256x64xf32>, vector<64x128xf32>, vector<256x128xf32> -> vector<256x128xf32>
    %17 = arith.mulf %14, %16 : vector<256x128xf32>
    %cst_12 = arith.constant 1.000000e+00 : f32
    %18 = vector.broadcast %cst_12 : f32 to vector<1x128xf32>
    %cst_13 = arith.constant dense<0.000000e+00> : vector<1x256xf32>
    %19 = tpu.matmul %18, %17, %cst_13 {dimension_numbers = #tpu.dot_dimension_numbers<[1], [1], [0], [0], [0, 0, 1, 0], [], []>} : vector<1x128xf32>, vector<256x128xf32>, vector<1x256xf32> -> vector<1x256xf32>
    %c0_14 = arith.constant 0 : index
    %c0_15 = arith.constant 0 : index
    %20 = vector.load %arg5[%c0_14, %c0_15] : memref<1x256xf32, #tpu.memory_space<vmem>>, vector<1x256xf32>
    %21 = arith.addf %19, %20 : vector<1x256xf32>
    %c0_16 = arith.constant 0 : index
    %c0_17 = arith.constant 0 : index
    %22 = vector.load %arg6[%c0_16, %c0_17] : memref<1x256xf32, #tpu.memory_space<vmem>>, vector<1x256xf32>
    tpu.vector_store %arg6[%c0_16, %c0_17], %21 {strides = array<i32>} : memref<1x256xf32, #tpu.memory_space<vmem>>, vector<1x256xf32>,
    return
  }
  func.func @transform_0(%arg0: i32) -> (i32, i32) {
    %c0_i32 = arith.constant 0 : i32
    %c0_i32_0 = arith.constant 0 : i32
    return %arg0, %c0_i32 : i32, i32
  }
  func.func @transform_1(%arg0: i32) -> (i32, i32) {
    %c0_i32 = arith.constant 0 : i32
    %c0_i32_0 = arith.constant 0 : i32
    return %arg0, %c0_i32 : i32, i32
  }
  func.func @transform_2(%arg0: i32) -> (i32, i32) {
    %c0_i32 = arith.constant 0 : i32
    %c0_i32_0 = arith.constant 0 : i32
    %c0_i32_1 = arith.constant 0 : i32
    return %c0_i32, %c0_i32_0 : i32, i32
  }
  func.func @transform_3(%arg0: i32) -> (i32, i32) {
    %c0_i32 = arith.constant 0 : i32
    %c0_i32_0 = arith.constant 0 : i32
    %c0_i32_1 = arith.constant 0 : i32
    return %c0_i32, %c0_i32_0 : i32, i32
  }
  func.func @transform_4(%arg0: i32) -> (i32, i32) {
    %c0_i32 = arith.constant 0 : i32
    %c0_i32_0 = arith.constant 0 : i32
    return %arg0, %c0_i32 : i32, i32
  }
  func.func @transform_5(%arg0: i32) -> (i32, i32) {
    %c0_i32 = arith.constant 0 : i32
    %c0_i32_0 = arith.constant 0 : i32
    return %arg0, %c0_i32 : i32, i32
  }
}

module attributes {stable_mosaic.version = 11 : i64} {
  func.func @glove_kernel(%arg0: i32, %arg1: memref<256x1xi32, #tpu.memory_space<vmem>>, %arg2: memref<256x1xi32, #tpu.memory_space<vmem>>, %arg3: memref<64x128xf32, #tpu.memory_space<vmem>>, %arg4: memref<64x128xf32, #tpu.memory_space<vmem>>, %arg5: memref<1x256xf32, #tpu.memory_space<vmem>>, %arg6: memref<1x256xf32, #tpu.memory_space<vmem>>) attributes {dimension_semantics = [#tpu.dimension_semantics<arbitrary>], iteration_bounds = array<i64: 1>, scalar_prefetch = 0 : i64, scratch_operands = 0 : i64, tpu.core_type = #tpu.core_type<tc>, window_params = [{transform_indices = @transform_0, window_bounds = array<i64: 256, 1>}, {transform_indices = @transform_1, window_bounds = array<i64: 256, 1>}, {pipeline_mode = #tpu.pipeline_mode<synchronous>, transform_indices = @transform_2, window_bounds = array<i64: 64, 128>}, {pipeline_mode = #tpu.pipeline_mode<synchronous>, transform_indices = @transform_3, window_bounds = array<i64: 64, 128>}, {transform_indices = @transform_4, window_bounds = array<i64: 1, 256>}, {transform_indices = @transform_5, window_bounds = array<i64: 1, 256>}]} {
    %c0 = arith.constant 0 : index
    %c0_0 = arith.constant 0 : index
    %0 = vector.load %arg1[%c0, %c0_0] : memref<256x1xi32, #tpu.memory_space<vmem>>, vector<256x1xi32>
    %c0_1 = arith.constant 0 : index
    %c0_2 = arith.constant 0 : index
    %1 = vector.load %arg2[%c0_1, %c0_2] : memref<256x1xi32, #tpu.memory_space<vmem>>, vector<256x1xi32>
    %2 = tpu.iota {dimensions = array<i32: 1>} : vector<256x64xi32>
    %3 = vector.broadcast %0 : vector<256x1xi32> to vector<256x64xi32>
    %4 = arith.cmpi eq, %2, %3 : vector<256x64xi32>
    %cst = arith.constant 1.000000e+00 : f32
    %cst_3 = arith.constant 0.000000e+00 : f32
    %5 = vector.broadcast %cst : f32 to vector<256x64xf32>
    %6 = vector.broadcast %cst_3 : f32 to vector<256x64xf32>
    %7 = arith.select %4, %5, %6 : vector<256x64xi1>, vector<256x64xf32>
    %8 = vector.broadcast %1 : vector<256x1xi32> to vector<256x64xi32>
    %9 = arith.cmpi eq, %2, %8 : vector<256x64xi32>
    %cst_4 = arith.constant 1.000000e+00 : f32
    %cst_5 = arith.constant 0.000000e+00 : f32
    %10 = vector.broadcast %cst_4 : f32 to vector<256x64xf32>
    %11 = vector.broadcast %cst_5 : f32 to vector<256x64xf32>
    %12 = arith.select %9, %10, %11 : vector<256x64xi1>, vector<256x64xf32>
    %c0_6 = arith.constant 0 : index
    %c0_7 = arith.constant 0 : index
    %13 = vector.load %arg3[%c0_6, %c0_7] : memref<64x128xf32, #tpu.memory_space<vmem>>, vector<64x128xf32>
    %cst_8 = arith.constant dense<0.000000e+00> : vector<256x128xf32>
    %14 = tpu.matmul %7, %13, %cst_8 {dimension_numbers = #tpu.dot_dimension_numbers<[1], [0], [0], [1], [0, 0, 1, 1], [], []>} : vector<256x64xf32>, vector<64x128xf32>, vector<256x128xf32> -> vector<256x128xf32>
    %c0_9 = arith.constant 0 : index
    %c0_10 = arith.constant 0 : index
    %15 = vector.load %arg4[%c0_9, %c0_10] : memref<64x128xf32, #tpu.memory_space<vmem>>, vector<64x128xf32>
    %cst_11 = arith.constant dense<0.000000e+00> : vector<256x128xf32>
    %16 = tpu.matmul %12, %15, %cst_11 {dimension_numbers = #tpu.dot_dimension_numbers<[1], [0], [0], [1], [0, 0, 1, 1], [], []>} : vector<256x64xf32>, vector<64x128xf32>, vector<256x128xf32> -> vector<256x128xf32>
    %17 = arith.mulf %14, %16 : vector<256x128xf32>
    %cst_12 = arith.constant 1.000000e+00 : f32
    %18 = vector.broadcast %cst_12 : f32 to vector<1x128xf32>
    %cst_13 = arith.constant dense<0.000000e+00> : vector<1x256xf32>
    %19 = tpu.matmul %18, %17, %cst_13 {dimension_numbers = #tpu.dot_dimension_numbers<[1], [1], [0], [0], [0, 0, 1, 0], [], []>} : vector<1x128xf32>, vector<256x128xf32>, vector<1x256xf32> -> vector<1x256xf32>
    %c0_14 = arith.constant 0 : index
    %c0_15 = arith.constant 0 : index
    %20 = vector.load %arg5[%c0_14, %c0_15] : memref<1x256xf32, #tpu.memory_space<vmem>>, vector<1x256xf32>
    %21 = arith.addf %19, %20 : vector<1x256xf32>
    %c0_16 = arith.constant 0 : index
    %c0_17 = arith.constant 0 : index
    %22 = vector.load %arg6[%c0_16, %c0_17] : memref<1x256xf32, #tpu.memory_space<vmem>>, vector<1x256xf32>
    tpu.vector_store %arg6[%c0_16, %c0_17], %21 {strides = array<i32>} : memref<1x256xf32, #tpu.memory_space<vmem>>, vector<1x256xf32>,
    return
  }
  func.func @transform_0(%arg0: i32) -> (i32, i32) {
    %c0_i32 = arith.constant 0 : i32
    %c0_i32_0 = arith.constant 0 : i32
    return %arg0, %c0_i32 : i32, i32
  }
  func.func @transform_1(%arg0: i32) -> (i32, i32) {
    %c0_i32 = arith.constant 0 : i32
    %c0_i32_0 = arith.constant 0 : i32
    return %arg0, %c0_i32 : i32, i32
  }
  func.func @transform_2(%arg0: i32) -> (i32, i32) {
    %c0_i32 = arith.constant 0 : i32
    %c0_i32_0 = arith.constant 0 : i32
    %c0_i32_1 = arith.constant 0 : i32
    return %c0_i32, %c0_i32_0 : i32, i32
  }
  func.func @transform_3(%arg0: i32) -> (i32, i32) {
    %c0_i32 = arith.constant 0 : i32
    %c0_i32_0 = arith.constant 0 : i32
    %c0_i32_1 = arith.constant 0 : i32
    return %c0_i32, %c0_i32_0 : i32, i32
  }
  func.func @transform_4(%arg0: i32) -> (i32, i32) {
    %c0_i32 = arith.constant 0 : i32
    %c0_i32_0 = arith.constant 0 : i32
    return %arg0, %c0_i32 : i32, i32
  }
  func.func @transform_5(%arg0: i32) -> (i32, i32) {
    %c0_i32 = arith.constant 0 : i32
    %c0_i32_0 = arith.constant 0 : i32
    return %arg0, %c0_i32 : i32, i32
  }
}

</mosaic_0001>

<bundles_post_ra>
// kernel: tpu_custom_call.1
= control target key start
LH: loop header
LB: loop body
LE: loop exit
PB: predicated region body
PF: predicated region fallthrough
CT: control target
= control target key end

     0   :  { %v1619_v2 = vmov 0   ;;  %s2162_s0 = inlined_call_operand.vmem [shape: s32[256,1], index: 0, kind: input, shape index: {}]   ;;  %s2163_s1 = inlined_call_operand.vmem [shape: s32[256,1], index: 1, kind: input, shape index: {}]   ;;  %s2164_s2 = inlined_call_operand.vmem [shape: f32[64,128], index: 2, kind: input, shape index: {}]   ;;  %s2165_s3 = inlined_call_operand.vmem [shape: f32[64,128], index: 3, kind: input, shape index: {}]   ;;  %s2166_s4 = inlined_call_operand.vmem [shape: f32[1,256], index: 4, kind: input, shape index: {}]   ;;  %s2167_s5 = inlined_call_operand.hbm [shape: f32[1,256], index: 5, kind: output, shape index: {}]  }
   0x1   :  { %v22_v0 = vld [vmem:[%s2162_s0 + $0x8] sm:$0xff]  ;;  %v21_v1 = vld [vmem:[%s2162_s0] sm:$0xff]  ;;  %1594 = vset.pattern.permute.xlu1 %v1619_v2  ;;  %1593 = vset.pattern.permute.xlu0 %v1619_v2  ;;  %v55_v5 = vld [vmem:[%s2163_s1 + $0x10] sm:$0xff] }
   0x2   :  { %91 = vperm.xlu1 %1594, %v22_v0   ;;  %88 = vperm.xlu0 %1593, %v21_v1   ;;  %v54_v3 = vld [vmem:[%s2163_s1 + $0x8] sm:$0xff]  ;;  %v53_v4 = vld [vmem:[%s2163_s1] sm:$0xff]  ;;  %v23_v6 = vld [vmem:[%s2162_s0 + $0x10] sm:$0xff] }
   0x3   :  { %v56_v7 = vld [vmem:[%s2163_s1 + $0x18] sm:$0xff]  ;;  %v57_v9 = vld [vmem:[%s2163_s1 + $0x20] sm:$0xff]  ;;  %v58_v11 = vld [vmem:[%s2163_s1 + $0x28] sm:$0xff] }
   0x4   :  { %v24_v8 = vld [vmem:[%s2162_s0 + $0x18] sm:$0xff]  ;;  %v25_v10 = vld [vmem:[%s2162_s0 + $0x20] sm:$0xff]  ;;  %v26_v12 = vld [vmem:[%s2162_s0 + $0x28] sm:$0xff] }
   0x5   :  { %v407_v13 = vld [vmem:[%s2164_s2] sm:$0xff]  ;;  %v408_v14 = vld [vmem:[%s2164_s2 + $0x8] sm:$0xff]  ;;  %v409_v16 = vld [vmem:[%s2164_s2 + $0x10] sm:$0xff] }
   0x6   :  { %251 = vperm.xlu1 %1594, %v54_v3   ;;  %248 = vperm.xlu0 %1593, %v53_v4   ;;  %v1524_v15 = vpack.c.bf16 %v408_v14, %v407_v13  ;;  %v410_v17 = vld [vmem:[%s2164_s2 + $0x18] sm:$0xff]  ;;  %v737_v18 = vld [vmem:[%s2165_s3] sm:$0xff]  ;;  %v738_v19 = vld [vmem:[%s2165_s3 + $0x8] sm:$0xff] }
   0x7   :  { %v59_v20 = vld [vmem:[%s2163_s1 + $0x30] sm:$0xff]  ;;  %v1528_v22 = vpack.c.bf16 %v410_v17, %v409_v16  ;;  %v1540_v23 = vpack.c.bf16 %v738_v19, %v737_v18  ;;  %v411_v24 = vld [vmem:[%s2164_s2 + $0x20] sm:$0xff]  ;;  %v412_v25 = vld [vmem:[%s2164_s2 + $0x28] sm:$0xff] }
   0x8   :  { %v27_v21 = vld [vmem:[%s2162_s0 + $0x30] sm:$0xff]  ;;  %1525 = vmatprep.subr.bf16.mxu0 %v1524_v15  ;;  %v740_v27 = vld [vmem:[%s2165_s3 + $0x18] sm:$0xff]  ;;  %v1532_v29 = vpack.c.bf16 %v412_v25, %v411_v24  ;;  %v741_v30 = vld [vmem:[%s2165_s3 + $0x20] sm:$0xff] }
   0x9   :  { %v739_v26 = vld [vmem:[%s2165_s3 + $0x10] sm:$0xff]  ;;  %1527 = vmatpush3.bf16.msra.mxu0 %v1524_v15  ;;  %1541 = vmatprep.subr.bf16.mxu1 %v1540_v23  ;;  %v742_v31 = vld [vmem:[%s2165_s3 + $0x28] sm:$0xff]  ;;  %v414_v33 = vld [vmem:[%s2164_s2 + $0x38] sm:$0xff] }
   0xa   :  { %254 = vperm.xlu1 %1594, %v55_v5   ;;  %94 = vperm.xlu0 %1593, %v23_v6   ;;  %v1544_v28 = vpack.c.bf16 %v740_v27, %v739_v26  ;;  %v413_v32 = vld [vmem:[%s2164_s2 + $0x30] sm:$0xff] }
   0xb   :  { %1529 = vmatprep.subr.bf16.mxu0 %v1528_v22  ;;  %1543 = vmatpush3.bf16.msra.mxu1 %v1540_v23 }
   0xe   :  { %257 = vperm.xlu1 %1594, %v56_v7   ;;  %97 = vperm.xlu0 %1593, %v24_v8  }
  0x12   :  { %260 = vperm.xlu1 %1594, %v57_v9   ;;  %100 = vperm.xlu0 %1593, %v25_v10  }
  0x16   :  { %263 = vperm.xlu1 %1594, %v58_v11   ;;  %103 = vperm.xlu0 %1593, %v26_v12  }
  0x1a   :  { %266 = vperm.xlu1 %1594, %v59_v20   ;;  %106 = vperm.xlu0 %1593, %v27_v21  }
  0x1b   :  { %10 = vsyncpa [#allocation3], 0  ;;  %v60_v34 = vld [vmem:[%s2163_s1 + $0x38] sm:$0xff]  ;;  %1545 = vmatprep.subr.bf16.mxu1 %v1544_v28  ;;  %v1548_v36 = vpack.c.bf16 %v742_v31, %v741_v30  ;;  %1531 = vmatpush3.bf16.msra.mxu0 %v1528_v22  ;;  %v743_v37 = vld [vmem:[%s2165_s3 + $0x30] sm:$0xff]  ;;  %v1536_v39 = vpack.c.bf16 %v414_v33, %v413_v32  ;;  %v85_v23 = vlaneseq  ;;  %vm415_vm0 = vcmask 523264   ;;  %s1623_s20 = smov [#allocation2]  }
  0x1c   :  { %v28_v35 = vld [vmem:[%s2162_s0 + $0x38] sm:$0xff]  ;;  %1533 = vmatprep.subr.bf16.mxu0 %v1532_v29  ;;  %1547 = vmatpush3.bf16.msra.mxu1 %v1544_v28  ;;  %v61_v40 = vld [vmem:[%s2163_s1 + $0x40] sm:$0xff]  ;;  %v62_v43 = vld [vmem:[%s2163_s1 + $0x48] sm:$0xff]  ;;  %s1210_s21 = sshll.u32 %s1623_s20, 4  ;;  %s1211_s21 = int_to_ptr.vmem [resolvable:$true] %s1210_s21 }
  0x1d   :  { %v744_v38 = vld [vmem:[%s2165_s3 + $0x38] sm:$0xff]  ;;  %v29_v41 = vld [vmem:[%s2162_s0 + $0x40] sm:$0xff]  ;;  %1549 = vmatprep.subr.bf16.mxu1 %v1548_v36  ;;  %v30_v44 = vld [vmem:[%s2162_s0 + $0x48] sm:$0xff]  ;;  %v1895_v26 = vand.u32 127, %v85_v23  ;;  %p1600_p1 = scmp.lt.s32.totalorder %s1211_s21, %s1211_s21 }
  0x1e   :  { %269 = vperm.xlu1 %1594, %v60_v34   ;;  %109 = vperm.xlu0 %1593, %v28_v35   ;;  %v1552_v42 = vpack.c.bf16 %v744_v38, %v743_v37  ;;  %v63_v45 = vld [vmem:[%s2163_s1 + $0x50] sm:$0xff]  ;;  %v64_v47 = vld [vmem:[%s2163_s1 + $0x58] sm:$0xff]  ;;  %v65_v49 = vld [vmem:[%s2163_s1 + $0x60] sm:$0xff] }
  0x1f   :  { %1535 = vmatpush3.bf16.msra.mxu0 %v1532_v29  ;;  %v31_v46 = vld [vmem:[%s2162_s0 + $0x50] sm:$0xff]  ;;  %v32_v48 = vld [vmem:[%s2162_s0 + $0x58] sm:$0xff]  ;;  %v33_v50 = vld [vmem:[%s2162_s0 + $0x60] sm:$0xff]  ;;  %v1620_v29 = vmov 0.0  }
  0x20   :  { %1537 = vmatprep.subr.bf16.mxu0 %v1536_v39  ;;  %1551 = vmatpush3.bf16.msra.mxu1 %v1548_v36  ;;  %v66_v51 = vld [vmem:[%s2163_s1 + $0x68] sm:$0xff]  ;;  %v67_v53 = vld [vmem:[%s2163_s1 + $0x70] sm:$0xff]  ;;  %v68_v55 = vld [vmem:[%s2163_s1 + $0x78] sm:$0xff] }
  0x21   :  { %1553 = vmatprep.subr.bf16.mxu1 %v1552_v42  ;;  %v34_v52 = vld [vmem:[%s2162_s0 + $0x68] sm:$0xff]  ;;  %v35_v54 = vld [vmem:[%s2162_s0 + $0x70] sm:$0xff]  ;;  %v36_v56 = vld [vmem:[%s2162_s0 + $0x78] sm:$0xff] }
  0x22   :  { %272 = vperm.xlu1 %1594, %v61_v40   ;;  %112 = vperm.xlu0 %1593, %v29_v41   ;;  %v69_v57 = vld [vmem:[%s2163_s1 + $0x80] sm:$0xff]  ;;  %v70_v59 = vld [vmem:[%s2163_s1 + $0x88] sm:$0xff]  ;;  %v71_v61 = vld [vmem:[%s2163_s1 + $0x90] sm:$0xff] }
  0x23   :  { %1539 = vmatpush3.bf16.msra.mxu0 %v1536_v39  ;;  %v37_v58 = vld [vmem:[%s2162_s0 + $0x80] sm:$0xff]  ;;  %v38_v60 = vld [vmem:[%s2162_s0 + $0x88] sm:$0xff]  ;;  %v39_v62 = vld [vmem:[%s2162_s0 + $0x90] sm:$0xff] }
  0x24   :  { %1555 = vmatpush3.bf16.msra.mxu1 %v1552_v42  ;;  %v72_v63 = vld [vmem:[%s2163_s1 + $0x98] sm:$0xff]  ;;  %v73_v1 = vld [vmem:[%s2163_s1 + $0xa0] sm:$0xff]  ;;  %v74_v3 = vld [vmem:[%s2163_s1 + $0xa8] sm:$0xff] }
  0x25   :  { %v40_v0 = vld [vmem:[%s2162_s0 + $0x98] sm:$0xff]  ;;  %v41_v2 = vld [vmem:[%s2162_s0 + $0xa0] sm:$0xff]  ;;  %v42_v4 = vld [vmem:[%s2162_s0 + $0xa8] sm:$0xff] }
  0x26   :  { %275 = vperm.xlu1 %1594, %v62_v43   ;;  %115 = vperm.xlu0 %1593, %v30_v44   ;;  %v75_v5 = vld [vmem:[%s2163_s1 + $0xb0] sm:$0xff]  ;;  %v76_v7 = vld [vmem:[%s2163_s1 + $0xb8] sm:$0xff]  ;;  %v77_v9 = vld [vmem:[%s2163_s1 + $0xc0] sm:$0xff] }
  0x27   :  { %v43_v6 = vld [vmem:[%s2162_s0 + $0xb0] sm:$0xff]  ;;  %v44_v8 = vld [vmem:[%s2162_s0 + $0xb8] sm:$0xff]  ;;  %v45_v10 = vld [vmem:[%s2162_s0 + $0xc0] sm:$0xff] }
  0x28   :  { %v78_v11 = vld [vmem:[%s2163_s1 + $0xc8] sm:$0xff]  ;;  %v79_v13 = vld [vmem:[%s2163_s1 + $0xd0] sm:$0xff]  ;;  %v80_v15 = vld [vmem:[%s2163_s1 + $0xd8] sm:$0xff] }
  0x29   :  { %v46_v12 = vld [vmem:[%s2162_s0 + $0xc8] sm:$0xff]  ;;  %v47_v14 = vld [vmem:[%s2162_s0 + $0xd0] sm:$0xff]  ;;  %v48_v16 = vld [vmem:[%s2162_s0 + $0xd8] sm:$0xff] }
  0x2a   :  { %278 = vperm.xlu1 %1594, %v63_v45   ;;  %118 = vperm.xlu0 %1593, %v31_v46   ;;  %v81_v17 = vld [vmem:[%s2163_s1 + $0xe0] sm:$0xff]  ;;  %v82_v19 = vld [vmem:[%s2163_s1 + $0xe8] sm:$0xff]  ;;  %v83_v21 = vld [vmem:[%s2163_s1 + $0xf0] sm:$0xff] }
  0x2b   :  { %v49_v18 = vld [vmem:[%s2162_s0 + $0xe0] sm:$0xff]  ;;  %v50_v20 = vld [vmem:[%s2162_s0 + $0xe8] sm:$0xff]  ;;  %v51_v22 = vld [vmem:[%s2162_s0 + $0xf0] sm:$0xff] }
  0x2c   :  { %v84_v24 = vld [vmem:[%s2163_s1 + $0xf8] sm:$0xff] }
  0x2d   :  { %v52_v25 = vld [vmem:[%s2162_s0 + $0xf8] sm:$0xff] }
  0x2e   :  { %281 = vperm.xlu1 %1594, %v64_v47   ;;  %121 = vperm.xlu0 %1593, %v32_v48  }
  0x32   :  { %284 = vperm.xlu1 %1594, %v65_v49   ;;  %124 = vperm.xlu0 %1593, %v33_v50  }
  0x36   :  { %287 = vperm.xlu1 %1594, %v66_v51   ;;  %127 = vperm.xlu0 %1593, %v34_v52  }
  0x3a   :  { %290 = vperm.xlu1 %1594, %v67_v53   ;;  %130 = vperm.xlu0 %1593, %v35_v54  }
  0x3e   :  { %293 = vperm.xlu1 %1594, %v68_v55   ;;  %133 = vperm.xlu0 %1593, %v36_v56  }
  0x42   :  { %296 = vperm.xlu1 %1594, %v69_v57   ;;  %136 = vperm.xlu0 %1593, %v37_v58  }
  0x46   :  { %299 = vperm.xlu1 %1594, %v70_v59   ;;  %139 = vperm.xlu0 %1593, %v38_v60  }
  0x4a   :  { %302 = vperm.xlu1 %1594, %v71_v61   ;;  %142 = vperm.xlu0 %1593, %v39_v62  }
  0x4e   :  { %305 = vperm.xlu1 %1594, %v72_v63   ;;  %145 = vperm.xlu0 %1593, %v40_v0  }
  0x52   :  { %308 = vperm.xlu1 %1594, %v73_v1   ;;  %148 = vperm.xlu0 %1593, %v41_v2  }
  0x56   :  { %311 = vperm.xlu1 %1594, %v74_v3   ;;  %151 = vperm.xlu0 %1593, %v42_v4  }
  0x5a   :  { %314 = vperm.xlu1 %1594, %v75_v5   ;;  %154 = vperm.xlu0 %1593, %v43_v6  }
  0x5e   :  { %317 = vperm.xlu1 %1594, %v76_v7   ;;  %157 = vperm.xlu0 %1593, %v44_v8  }
  0x62   :  { %320 = vperm.xlu1 %1594, %v77_v9   ;;  %160 = vperm.xlu0 %1593, %v45_v10  }
  0x66   :  { %323 = vperm.xlu1 %1594, %v78_v11   ;;  %163 = vperm.xlu0 %1593, %v46_v12  }
  0x6a   :  { %326 = vperm.xlu1 %1594, %v79_v13   ;;  %166 = vperm.xlu0 %1593, %v47_v14  }
  0x6e   :  { %329 = vperm.xlu1 %1594, %v80_v15   ;;  %169 = vperm.xlu0 %1593, %v48_v16  }
  0x72   :  { %332 = vperm.xlu1 %1594, %v81_v17   ;;  %172 = vperm.xlu0 %1593, %v49_v18  }
  0x76   :  { %335 = vperm.xlu1 %1594, %v82_v19   ;;  %175 = vperm.xlu0 %1593, %v50_v20  }
  0x7a   :  { %338 = vperm.xlu1 %1594, %v83_v21   ;;  %178 = vperm.xlu0 %1593, %v51_v22  }
  0x7e   :  { %341 = vperm.xlu1 %1594, %v84_v24   ;;  %181 = vperm.xlu0 %1593, %v52_v25  }
  0x81   :  { %v92_v27 = vpop.permute.xlu1 %91  ;;  %v89_v28 = vpop.permute.xlu0 %88 }
  0x82   :  { %vm184_vm1 = vcmp.eq.s32.totalorder %v1895_v26, %v92_v27  ;;  %vm183_vm2 = vcmp.eq.s32.totalorder %v1895_v26, %v89_v28 }
  0x83   :  { %v216_v30 = vsel %vm184_vm1, 1.0, %v1620_v29  ;;  %v215_v31 = vsel %vm183_vm2, 1.0, %v1620_v29 }
  0x84   :  { %1412 = vmatprep.mubr.msk.f32.mxu0 %vm415_vm0, %v215_v31 }
  0x85   :  { %v252_v32 = vpop.permute.xlu1 %251  ;;  %1413 = vmatmul.mubr.msk.f32.vlgmr.msra.gmra.mrb[0].mxu0 %vm415_vm0, %v216_v30  ;;  %v249_v33 = vpop.permute.xlu0 %248 }
  0x86   :  { %vm344_vm3 = vcmp.eq.s32.totalorder %v1895_v26, %v252_v32  ;;  %vm343_vm4 = vcmp.eq.s32.totalorder %v1895_v26, %v249_v33 }
  0x87   :  { %v376_v34 = vsel %vm344_vm3, 1.0, %v1620_v29  ;;  %v375_v35 = vsel %vm343_vm4, 1.0, %v1620_v29 }
  0x88   :  { %1476 = vmatprep.mubr.msk.f32.mxu1 %vm415_vm0, %v375_v35 }
  0x89   :  { %v255_v36 = vpop.permute.xlu1 %254  ;;  %1477 = vmatmul.mubr.msk.f32.vlgmr.msra.gmra.mrb[0].mxu1 %vm415_vm0, %v376_v34  ;;  %v95_v37 = vpop.permute.xlu0 %94 }
  0x8a   :  { %vm345_vm5 = vcmp.eq.s32.totalorder %v1895_v26, %v255_v36  ;;  %vm185_vm6 = vcmp.eq.s32.totalorder %v1895_v26, %v95_v37 }
  0x8b   :  { %v377_v38 = vsel %vm345_vm5, 1.0, %v1620_v29  ;;  %v217_v39 = vsel %vm185_vm6, 1.0, %v1620_v29 }
  0x8c   :  { %1415 = vmatprep.mubr.msk.f32.mxu0 %vm415_vm0, %v217_v39  ;;  %1479 = vmatprep.mubr.msk.f32.mxu1 %vm415_vm0, %v377_v38 }
  0x8d   :  { %v258_v40 = vpop.permute.xlu1 %257  ;;  %v98_v41 = vpop.permute.xlu0 %97 }
  0x8e   :  { %vm346_vm7 = vcmp.eq.s32.totalorder %v1895_v26, %v258_v40  ;;  %vm186_vm8 = vcmp.eq.s32.totalorder %v1895_v26, %v98_v41 }
  0x8f   :  { %v378_v42 = vsel %vm346_vm7, 1.0, %v1620_v29  ;;  %v218_v43 = vsel %vm186_vm8, 1.0, %v1620_v29 }
  0x90   :  { %1416 = vmatmul.mubr.msk.f32.gmra.mrb[2].mxu0 %vm415_vm0, %v218_v43  ;;  %1480 = vmatmul.mubr.msk.f32.gmra.mrb[2].mxu1 %vm415_vm0, %v378_v42 }
  0x91   :  { %v261_v44 = vpop.permute.xlu1 %260  ;;  %v101_v45 = vpop.permute.xlu0 %100 }
  0x92   :  { %vm347_vm9 = vcmp.eq.s32.totalorder %v1895_v26, %v261_v44  ;;  %vm187_vm10 = vcmp.eq.s32.totalorder %v1895_v26, %v101_v45 }
  0x93   :  { %v379_v46 = vsel %vm347_vm9, 1.0, %v1620_v29  ;;  %v219_v47 = vsel %vm187_vm10, 1.0, %v1620_v29 }
  0x94   :  { %1418 = vmatprep.mubr.msk.f32.mxu0 %vm415_vm0, %v219_v47  ;;  %1482 = vmatprep.mubr.msk.f32.mxu1 %vm415_vm0, %v379_v46 }
  0x95   :  { %v264_v48 = vpop.permute.xlu1 %263  ;;  %v104_v49 = vpop.permute.xlu0 %103 }
  0x96   :  { %vm348_vm11 = vcmp.eq.s32.totalorder %v1895_v26, %v264_v48  ;;  %vm188_vm12 = vcmp.eq.s32.totalorder %v1895_v26, %v104_v49 }
  0x97   :  { %v380_v50 = vsel %vm348_vm11, 1.0, %v1620_v29  ;;  %v220_v51 = vsel %vm188_vm12, 1.0, %v1620_v29 }
  0x98   :  { %1419 = vmatmul.mubr.msk.f32.gmra.mrb[4].mxu0 %vm415_vm0, %v220_v51  ;;  %1483 = vmatmul.mubr.msk.f32.gmra.mrb[4].mxu1 %vm415_vm0, %v380_v50 }
  0x99   :  { %v267_v52 = vpop.permute.xlu1 %266  ;;  %v107_v53 = vpop.permute.xlu0 %106 }
  0x9a   :  { %vm349_vm13 = vcmp.eq.s32.totalorder %v1895_v26, %v267_v52  ;;  %vm189_vm14 = vcmp.eq.s32.totalorder %v1895_v26, %v107_v53 }
  0x9b   :  { %v381_v54 = vsel %vm349_vm13, 1.0, %v1620_v29  ;;  %v221_v55 = vsel %vm189_vm14, 1.0, %v1620_v29 }
  0x9c   :  { %1421 = vmatprep.mubr.msk.f32.mxu0 %vm415_vm0, %v221_v55  ;;  %1485 = vmatprep.mubr.msk.f32.mxu1 %vm415_vm0, %v381_v54 }
  0x9d   :  { %v270_v56 = vpop.permute.xlu1 %269  ;;  %v110_v57 = vpop.permute.xlu0 %109 }
  0x9e   :  { %vm350_vm15 = vcmp.eq.s32.totalorder %v1895_v26, %v270_v56  ;;  %vm190_vm1 = vcmp.eq.s32.totalorder %v1895_v26, %v110_v57 }
  0x9f   :  { %v382_v58 = vsel %vm350_vm15, 1.0, %v1620_v29  ;;  %v222_v59 = vsel %vm190_vm1, 1.0, %v1620_v29 }
  0xa0   :  { %1422 = vmatmul.mubr.msk.f32.gmra.mrb[6].mxu0 %vm415_vm0, %v222_v59  ;;  %1486 = vmatmul.mubr.msk.f32.gmra.mrb[6].mxu1 %vm415_vm0, %v382_v58 }
  0xa1   :  { %v273_v60 = vpop.permute.xlu1 %272  ;;  %v113_v61 = vpop.permute.xlu0 %112 }
  0xa2   :  { %vm351_vm2 = vcmp.eq.s32.totalorder %v1895_v26, %v273_v60  ;;  %vm191_vm3 = vcmp.eq.s32.totalorder %v1895_v26, %v113_v61 }
  0xa3   :  { %v383_v62 = vsel %vm351_vm2, 1.0, %v1620_v29  ;;  %v223_v63 = vsel %vm191_vm3, 1.0, %v1620_v29 }
  0xa4   :  { %1424 = vmatprep.mubr.msk.f32.mxu0 %vm415_vm0, %v223_v63  ;;  %1488 = vmatprep.mubr.msk.f32.mxu1 %vm415_vm0, %v383_v62 }
  0xa5   :  { %v276_v0 = vpop.permute.xlu1 %275  ;;  %v116_v1 = vpop.permute.xlu0 %115 }
  0xa6   :  { %vm352_vm4 = vcmp.eq.s32.totalorder %v1895_v26, %v276_v0  ;;  %vm192_vm5 = vcmp.eq.s32.totalorder %v1895_v26, %v116_v1 }
  0xa7   :  { %v384_v2 = vsel %vm352_vm4, 1.0, %v1620_v29  ;;  %v224_v3 = vsel %vm192_vm5, 1.0, %v1620_v29 }
  0xa8   :  { %1425 = vmatmul.mubr.msk.f32.gmra.mrb[8].mxu0 %vm415_vm0, %v224_v3  ;;  %1489 = vmatmul.mubr.msk.f32.gmra.mrb[8].mxu1 %vm415_vm0, %v384_v2 }
  0xa9   :  { %v279_v4 = vpop.permute.xlu1 %278  ;;  %v119_v5 = vpop.permute.xlu0 %118 }
  0xaa   :  { %vm353_vm6 = vcmp.eq.s32.totalorder %v1895_v26, %v279_v4  ;;  %vm193_vm7 = vcmp.eq.s32.totalorder %v1895_v26, %v119_v5 }
  0xab   :  { %v385_v6 = vsel %vm353_vm6, 1.0, %v1620_v29  ;;  %v225_v7 = vsel %vm193_vm7, 1.0, %v1620_v29 }
  0xac   :  { %1427 = vmatprep.mubr.msk.f32.mxu0 %vm415_vm0, %v225_v7  ;;  %1491 = vmatprep.mubr.msk.f32.mxu1 %vm415_vm0, %v385_v6 }
  0xad   :  { %v282_v8 = vpop.permute.xlu1 %281  ;;  %v122_v9 = vpop.permute.xlu0 %121 }
  0xae   :  { %vm354_vm8 = vcmp.eq.s32.totalorder %v1895_v26, %v282_v8  ;;  %vm194_vm9 = vcmp.eq.s32.totalorder %v1895_v26, %v122_v9 }
  0xaf   :  { %v386_v10 = vsel %vm354_vm8, 1.0, %v1620_v29  ;;  %v226_v11 = vsel %vm194_vm9, 1.0, %v1620_v29 }
  0xb0   :  { %1428 = vmatmul.mubr.msk.f32.gmra.mrb[10].mxu0 %vm415_vm0, %v226_v11  ;;  %1492 = vmatmul.mubr.msk.f32.gmra.mrb[10].mxu1 %vm415_vm0, %v386_v10 }
  0xb1   :  { %v285_v12 = vpop.permute.xlu1 %284  ;;  %v125_v13 = vpop.permute.xlu0 %124 }
  0xb2   :  { %vm355_vm10 = vcmp.eq.s32.totalorder %v1895_v26, %v285_v12  ;;  %vm195_vm11 = vcmp.eq.s32.totalorder %v1895_v26, %v125_v13 }
  0xb3   :  { %v387_v14 = vsel %vm355_vm10, 1.0, %v1620_v29  ;;  %v227_v15 = vsel %vm195_vm11, 1.0, %v1620_v29 }
  0xb4   :  { %1430 = vmatprep.mubr.msk.f32.mxu0 %vm415_vm0, %v227_v15  ;;  %1494 = vmatprep.mubr.msk.f32.mxu1 %vm415_vm0, %v387_v14 }
  0xb5   :  { %v288_v16 = vpop.permute.xlu1 %287  ;;  %v128_v17 = vpop.permute.xlu0 %127 }
  0xb6   :  { %vm356_vm12 = vcmp.eq.s32.totalorder %v1895_v26, %v288_v16  ;;  %vm196_vm13 = vcmp.eq.s32.totalorder %v1895_v26, %v128_v17 }
  0xb7   :  { %v388_v18 = vsel %vm356_vm12, 1.0, %v1620_v29  ;;  %v228_v19 = vsel %vm196_vm13, 1.0, %v1620_v29 }
  0xb8   :  { %1431 = vmatmul.mubr.msk.f32.gmra.mrb[12].mxu0 %vm415_vm0, %v228_v19  ;;  %1495 = vmatmul.mubr.msk.f32.gmra.mrb[12].mxu1 %vm415_vm0, %v388_v18 }
  0xb9   :  { %v291_v20 = vpop.permute.xlu1 %290  ;;  %v131_v21 = vpop.permute.xlu0 %130 }
  0xba   :  { %vm357_vm14 = vcmp.eq.s32.totalorder %v1895_v26, %v291_v20  ;;  %vm197_vm15 = vcmp.eq.s32.totalorder %v1895_v26, %v131_v21 }
  0xbb   :  { %v389_v22 = vsel %vm357_vm14, 1.0, %v1620_v29  ;;  %v229_v24 = vsel %vm197_vm15, 1.0, %v1620_v29 }
  0xbc   :  { %1433 = vmatprep.mubr.msk.f32.mxu0 %vm415_vm0, %v229_v24  ;;  %1497 = vmatprep.mubr.msk.f32.mxu1 %vm415_vm0, %v389_v22 }
  0xbd   :  { %v294_v25 = vpop.permute.xlu1 %293  ;;  %v134_v27 = vpop.permute.xlu0 %133 }
  0xbe   :  { %vm358_vm1 = vcmp.eq.s32.totalorder %v1895_v26, %v294_v25  ;;  %vm198_vm2 = vcmp.eq.s32.totalorder %v1895_v26, %v134_v27 }
  0xbf   :  { %v390_v28 = vsel %vm358_vm1, 1.0, %v1620_v29  ;;  %v230_v30 = vsel %vm198_vm2, 1.0, %v1620_v29 }
  0xc0   :  { %1434 = vmatmul.mubr.msk.f32.gmra.mrb[14].mxu0 %vm415_vm0, %v230_v30  ;;  %1498 = vmatmul.mubr.msk.f32.gmra.mrb[14].mxu1 %vm415_vm0, %v390_v28 }
  0xc1   :  { %v297_v31 = vpop.permute.xlu1 %296  ;;  %v137_v32 = vpop.permute.xlu0 %136 }
  0xc2   :  { %vm359_vm3 = vcmp.eq.s32.totalorder %v1895_v26, %v297_v31  ;;  %vm199_vm4 = vcmp.eq.s32.totalorder %v1895_v26, %v137_v32 }
  0xc3   :  { %v391_v33 = vsel %vm359_vm3, 1.0, %v1620_v29  ;;  %v231_v34 = vsel %vm199_vm4, 1.0, %v1620_v29 }
  0xc4   :  { %1436 = vmatprep.mubr.msk.f32.mxu0 %vm415_vm0, %v231_v34  ;;  %1500 = vmatprep.mubr.msk.f32.mxu1 %vm415_vm0, %v391_v33 }
  0xc5   :  { %v300_v35 = vpop.permute.xlu1 %299  ;;  %v140_v36 = vpop.permute.xlu0 %139 }
  0xc6   :  { %vm360_vm5 = vcmp.eq.s32.totalorder %v1895_v26, %v300_v35  ;;  %vm200_vm6 = vcmp.eq.s32.totalorder %v1895_v26, %v140_v36  ;;  %v1621_v36 = vmov 1.0  }
  0xc7   :  { %v392_v37 = vsel %vm360_vm5, 1.0, %v1620_v29  ;;  %v232_v38 = vsel %vm200_vm6, 1.0, %v1620_v29 }
  0xc8   :  { %1437 = vmatmul.mubr.msk.f32.gmra.mrb[16].mxu0 %vm415_vm0, %v232_v38  ;;  %1501 = vmatmul.mubr.msk.f32.gmra.mrb[16].mxu1 %vm415_vm0, %v392_v37 }
  0xc9   :  { %v303_v39 = vpop.permute.xlu1 %302  ;;  %v143_v40 = vpop.permute.xlu0 %142 }
  0xca   :  { %vm361_vm7 = vcmp.eq.s32.totalorder %v1895_v26, %v303_v39  ;;  %vm201_vm8 = vcmp.eq.s32.totalorder %v1895_v26, %v143_v40 }
  0xcb   :  { %v393_v41 = vsel %vm361_vm7, 1.0, %v1620_v29  ;;  %v233_v42 = vsel %vm201_vm8, 1.0, %v1620_v29 }
  0xcc   :  { %1439 = vmatprep.mubr.msk.f32.mxu0 %vm415_vm0, %v233_v42  ;;  %1503 = vmatprep.mubr.msk.f32.mxu1 %vm415_vm0, %v393_v41 }
  0xcd   :  { %v306_v43 = vpop.permute.xlu1 %305  ;;  %v146_v44 = vpop.permute.xlu0 %145 }
  0xce   :  { %vm362_vm9 = vcmp.eq.s32.totalorder %v1895_v26, %v306_v43  ;;  %vm202_vm10 = vcmp.eq.s32.totalorder %v1895_v26, %v146_v44 }
  0xcf   :  { %v394_v45 = vsel %vm362_vm9, 1.0, %v1620_v29  ;;  %v234_v46 = vsel %vm202_vm10, 1.0, %v1620_v29 }
  0xd0   :  { %1440 = vmatmul.mubr.msk.f32.gmra.mrb[18].mxu0 %vm415_vm0, %v234_v46  ;;  %1504 = vmatmul.mubr.msk.f32.gmra.mrb[18].mxu1 %vm415_vm0, %v394_v45 }
  0xd1   :  { %v309_v47 = vpop.permute.xlu1 %308  ;;  %v149_v48 = vpop.permute.xlu0 %148 }
  0xd2   :  { %vm363_vm11 = vcmp.eq.s32.totalorder %v1895_v26, %v309_v47  ;;  %vm203_vm12 = vcmp.eq.s32.totalorder %v1895_v26, %v149_v48 }
  0xd3   :  { %v395_v49 = vsel %vm363_vm11, 1.0, %v1620_v29  ;;  %v235_v50 = vsel %vm203_vm12, 1.0, %v1620_v29 }
  0xd4   :  { %1442 = vmatprep.mubr.msk.f32.mxu0 %vm415_vm0, %v235_v50  ;;  %1506 = vmatprep.mubr.msk.f32.mxu1 %vm415_vm0, %v395_v49 }
  0xd5   :  { %v312_v51 = vpop.permute.xlu1 %311  ;;  %v152_v52 = vpop.permute.xlu0 %151 }
  0xd6   :  { %vm364_vm13 = vcmp.eq.s32.totalorder %v1895_v26, %v312_v51  ;;  %vm204_vm14 = vcmp.eq.s32.totalorder %v1895_v26, %v152_v52 }
  0xd7   :  { %v396_v53 = vsel %vm364_vm13, 1.0, %v1620_v29  ;;  %v236_v54 = vsel %vm204_vm14, 1.0, %v1620_v29 }
  0xd8   :  { %1443 = vmatmul.mubr.msk.f32.gmra.mrb[20].mxu0 %vm415_vm0, %v236_v54  ;;  %1507 = vmatmul.mubr.msk.f32.gmra.mrb[20].mxu1 %vm415_vm0, %v396_v53 }
  0xd9   :  { %v315_v55 = vpop.permute.xlu1 %314  ;;  %v155_v56 = vpop.permute.xlu0 %154 }
  0xda   :  { %vm365_vm15 = vcmp.eq.s32.totalorder %v1895_v26, %v315_v55  ;;  %vm205_vm1 = vcmp.eq.s32.totalorder %v1895_v26, %v155_v56 }
  0xdb   :  { %v397_v57 = vsel %vm365_vm15, 1.0, %v1620_v29  ;;  %v237_v58 = vsel %vm205_vm1, 1.0, %v1620_v29 }
  0xdc   :  { %1445 = vmatprep.mubr.msk.f32.mxu0 %vm415_vm0, %v237_v58  ;;  %1509 = vmatprep.mubr.msk.f32.mxu1 %vm415_vm0, %v397_v57 }
  0xdd   :  { %v318_v59 = vpop.permute.xlu1 %317  ;;  %v158_v60 = vpop.permute.xlu0 %157 }
  0xde   :  { %vm366_vm2 = vcmp.eq.s32.totalorder %v1895_v26, %v318_v59  ;;  %vm206_vm3 = vcmp.eq.s32.totalorder %v1895_v26, %v158_v60 }
  0xdf   :  { %v398_v61 = vsel %vm366_vm2, 1.0, %v1620_v29  ;;  %v238_v62 = vsel %vm206_vm3, 1.0, %v1620_v29 }
  0xe0   :  { %1446 = vmatmul.mubr.msk.f32.gmra.mrb[22].mxu0 %vm415_vm0, %v238_v62  ;;  %1510 = vmatmul.mubr.msk.f32.gmra.mrb[22].mxu1 %vm415_vm0, %v398_v61 }
  0xe1   :  { %v321_v63 = vpop.permute.xlu1 %320  ;;  %v161_v0 = vpop.permute.xlu0 %160 }
  0xe2   :  { %vm367_vm4 = vcmp.eq.s32.totalorder %v1895_v26, %v321_v63  ;;  %vm207_vm5 = vcmp.eq.s32.totalorder %v1895_v26, %v161_v0 }
  0xe3   :  { %v399_v1 = vsel %vm367_vm4, 1.0, %v1620_v29  ;;  %v239_v2 = vsel %vm207_vm5, 1.0, %v1620_v29 }
  0xe4   :  { %1448 = vmatprep.mubr.msk.f32.mxu0 %vm415_vm0, %v239_v2  ;;  %1512 = vmatprep.mubr.msk.f32.mxu1 %vm415_vm0, %v399_v1 }
  0xe5   :  { %v324_v3 = vpop.permute.xlu1 %323  ;;  %v164_v4 = vpop.permute.xlu0 %163 }
  0xe6   :  { %vm368_vm6 = vcmp.eq.s32.totalorder %v1895_v26, %v324_v3  ;;  %vm208_vm7 = vcmp.eq.s32.totalorder %v1895_v26, %v164_v4 }
  0xe7   :  { %v400_v5 = vsel %vm368_vm6, 1.0, %v1620_v29  ;;  %v240_v6 = vsel %vm208_vm7, 1.0, %v1620_v29 }
  0xe8   :  { %1449 = vmatmul.mubr.msk.f32.gmra.mrb[24].mxu0 %vm415_vm0, %v240_v6  ;;  %1513 = vmatmul.mubr.msk.f32.gmra.mrb[24].mxu1 %vm415_vm0, %v400_v5 }
  0xe9   :  { %v327_v7 = vpop.permute.xlu1 %326  ;;  %v167_v8 = vpop.permute.xlu0 %166 }
  0xea   :  { %vm369_vm8 = vcmp.eq.s32.totalorder %v1895_v26, %v327_v7  ;;  %vm209_vm9 = vcmp.eq.s32.totalorder %v1895_v26, %v167_v8 }
  0xeb   :  { %v401_v9 = vsel %vm369_vm8, 1.0, %v1620_v29  ;;  %v241_v10 = vsel %vm209_vm9, 1.0, %v1620_v29 }
  0xec   :  { %1451 = vmatprep.mubr.msk.f32.mxu0 %vm415_vm0, %v241_v10  ;;  %1515 = vmatprep.mubr.msk.f32.mxu1 %vm415_vm0, %v401_v9 }
  0xed   :  { %v330_v11 = vpop.permute.xlu1 %329  ;;  %v170_v12 = vpop.permute.xlu0 %169 }
  0xee   :  { %vm370_vm10 = vcmp.eq.s32.totalorder %v1895_v26, %v330_v11  ;;  %vm210_vm11 = vcmp.eq.s32.totalorder %v1895_v26, %v170_v12 }
  0xef   :  { %v402_v13 = vsel %vm370_vm10, 1.0, %v1620_v29  ;;  %v242_v14 = vsel %vm210_vm11, 1.0, %v1620_v29 }
  0xf0   :  { %1452 = vmatmul.mubr.msk.f32.gmra.mrb[26].mxu0 %vm415_vm0, %v242_v14  ;;  %1516 = vmatmul.mubr.msk.f32.gmra.mrb[26].mxu1 %vm415_vm0, %v402_v13 }
  0xf1   :  { %v333_v15 = vpop.permute.xlu1 %332  ;;  %v173_v16 = vpop.permute.xlu0 %172 }
  0xf2   :  { %vm371_vm12 = vcmp.eq.s32.totalorder %v1895_v26, %v333_v15  ;;  %vm211_vm13 = vcmp.eq.s32.totalorder %v1895_v26, %v173_v16 }
  0xf3   :  { %v403_v17 = vsel %vm371_vm12, 1.0, %v1620_v29  ;;  %v243_v18 = vsel %vm211_vm13, 1.0, %v1620_v29 }
  0xf4   :  { %1454 = vmatprep.mubr.msk.f32.mxu0 %vm415_vm0, %v243_v18  ;;  %1518 = vmatprep.mubr.msk.f32.mxu1 %vm415_vm0, %v403_v17 }
  0xf5   :  { %v336_v19 = vpop.permute.xlu1 %335  ;;  %v176_v20 = vpop.permute.xlu0 %175 }
  0xf6   :  { %vm372_vm14 = vcmp.eq.s32.totalorder %v1895_v26, %v336_v19  ;;  %vm212_vm15 = vcmp.eq.s32.totalorder %v1895_v26, %v176_v20 }
  0xf7   :  { %v404_v21 = vsel %vm372_vm14, 1.0, %v1620_v29  ;;  %v244_v22 = vsel %vm212_vm15, 1.0, %v1620_v29 }
  0xf8   :  { %1455 = vmatmul.mubr.msk.f32.gmra.mrb[28].mxu0 %vm415_vm0, %v244_v22  ;;  %1519 = vmatmul.mubr.msk.f32.gmra.mrb[28].mxu1 %vm415_vm0, %v404_v21 }
  0xf9   :  { %v339_v24 = vpop.permute.xlu1 %338  ;;  %v179_v25 = vpop.permute.xlu0 %178 }
  0xfa   :  { %vm373_vm1 = vcmp.eq.s32.totalorder %v1895_v26, %v339_v24  ;;  %vm213_vm2 = vcmp.eq.s32.totalorder %v1895_v26, %v179_v25 }
  0xfb   :  { %v405_v27 = vsel %vm373_vm1, 1.0, %v1620_v29  ;;  %v245_v28 = vsel %vm213_vm2, 1.0, %v1620_v29 }
  0xfc   :  { %1457 = vmatprep.mubr.msk.f32.mxu0 %vm415_vm0, %v245_v28  ;;  %1521 = vmatprep.mubr.msk.f32.mxu1 %vm415_vm0, %v405_v27 }
  0xfd   :  { %v342_v30 = vpop.permute.xlu1 %341  ;;  %v182_v31 = vpop.permute.xlu0 %181 }
  0xfe   :  { %vm374_vm3 = vcmp.eq.s32.totalorder %v1895_v26, %v342_v30  ;;  %vm214_vm4 = vcmp.eq.s32.totalorder %v1895_v26, %v182_v31 }
  0xff   :  { %v406_v32 = vsel %vm374_vm3, 1.0, %v1620_v29  ;;  %v246_v33 = vsel %vm214_vm4, 1.0, %v1620_v29 }
 0x100   :  { %1458 = vmatmul.mubr.msk.f32.gmra.mrb[30].mxu0 %vm415_vm0, %v246_v33  ;;  %1522 = vmatmul.mubr.msk.f32.gmra.mrb[30].mxu1 %vm415_vm0, %v406_v32  ;;  %vm1201_vm0 = vcmp.lt.s32.totalorder %v85_v23, 256 }
 0x101   :  { %1394 = vmatprep.mubr.f32.mxu0 %v1621_v36 }
 0x158   :  { %v1414_v34 = vpop.f32.mrb[0].mxu0 }
 0x159   :  { %v578_v35 = vpop.f32.mrb[1].mxu0 }
 0x15c   :  { %v1478_v37 = vpop.f32.mrb[0].mxu1 }
 0x15d   :  { %v1067_v38 = vmul.f32 %v1478_v37, %v1414_v34  ;;  %v907_v39 = vpop.f32.mrb[1].mxu1 }
 0x15e   :  { %v1066_v40 = vmul.f32 %v907_v39, %v578_v35 }
 0x160   :  { %v1558_v41 = vpack.c.bf16 %v1067_v38, %v1066_v40 }
 0x163   :  { %v1417_v42 = vpop.f32.mrb[2].mxu0  ;;  %v1481_v26 = vpop.f32.mrb[2].mxu1 }
 0x164   :  { %v2090_v43 = vmul.f32 %v1481_v26, %v1417_v42  ;;  %v588_v44 = vpop.f32.mrb[3].mxu0  ;;  %v917_v29 = vpop.f32.mrb[3].mxu1 }
 0x165   :  { %v1068_v45 = vmul.f32 %v917_v29, %v588_v44 }
 0x167   :  { %v1562_v46 = vpack.c.bf16 %v2090_v43, %v1068_v45 }
 0x16b   :  { %v1420_v47 = vpop.f32.mrb[4].mxu0  ;;  %v1484_v48 = vpop.f32.mrb[4].mxu1 }
 0x16c   :  { %v2093_v49 = vmul.f32 %v1484_v48, %v1420_v47  ;;  %v598_v50 = vpop.f32.mrb[5].mxu0  ;;  %v927_v51 = vpop.f32.mrb[5].mxu1 }
 0x16d   :  { %v2095_v52 = vmul.f32 %v927_v51, %v598_v50 }
 0x16f   :  { %v1566_v53 = vpack.c.bf16 %v2093_v49, %v2095_v52 }
 0x173   :  { %v1423_v54 = vpop.f32.mrb[6].mxu0  ;;  %v1487_v55 = vpop.f32.mrb[6].mxu1 }
 0x174   :  { %v2099_v56 = vmul.f32 %v1487_v55, %v1423_v54  ;;  %v608_v57 = vpop.f32.mrb[7].mxu0  ;;  %v937_v58 = vpop.f32.mrb[7].mxu1 }
 0x175   :  { %v2101_v59 = vmul.f32 %v937_v58, %v608_v57 }
 0x177   :  { %v1570_v60 = vpack.c.bf16 %v2099_v56, %v2101_v59 }
 0x17b   :  { %v1426_v61 = vpop.f32.mrb[8].mxu0  ;;  %v1490_v62 = vpop.f32.mrb[8].mxu1 }
 0x17c   :  { %v2105_v63 = vmul.f32 %v1490_v62, %v1426_v61  ;;  %v618_v0 = vpop.f32.mrb[9].mxu0  ;;  %v947_v1 = vpop.f32.mrb[9].mxu1 }
 0x17d   :  { %v2107_v2 = vmul.f32 %v947_v1, %v618_v0 }
 0x17f   :  { %v1574_v3 = vpack.c.bf16 %v2105_v63, %v2107_v2 }
 0x183   :  { %v1429_v4 = vpop.f32.mrb[10].mxu0  ;;  %v1493_v5 = vpop.f32.mrb[10].mxu1 }
 0x184   :  { %v2111_v6 = vmul.f32 %v1493_v5, %v1429_v4  ;;  %v628_v7 = vpop.f32.mrb[11].mxu0  ;;  %v957_v8 = vpop.f32.mrb[11].mxu1 }
 0x185   :  { %v2113_v9 = vmul.f32 %v957_v8, %v628_v7 }
 0x187   :  { %v1578_v10 = vpack.c.bf16 %v2111_v6, %v2113_v9  ;;  %v1101_v9 = vshrl.u32 %v85_v23, 7 }
 0x18b   :  { %v1432_v11 = vpop.f32.mrb[12].mxu0  ;;  %v1496_v12 = vpop.f32.mrb[12].mxu1 }
 0x18c   :  { %v2117_v13 = vmul.f32 %v1496_v12, %v1432_v11  ;;  %v638_v14 = vpop.f32.mrb[13].mxu0  ;;  %v967_v15 = vpop.f32.mrb[13].mxu1 }
 0x18d   :  { %v2119_v16 = vmul.f32 %v967_v15, %v638_v14 }
 0x18f   :  { %v1582_v17 = vpack.c.bf16 %v2117_v13, %v2119_v16  ;;  %v1098_v13 = vld [vmem:[%s2166_s4] sm:$0x3]  ;;  %v1106_v16 = vsub.s32 1, %v1101_v9  ;;  %s1595_s4 = scalar_lea.vmem %s1211_s21, 32 }
 0x190   :  { %p1596_p0 = scmp.ne.s32.totalorder %s1211_s21, %s1595_s4  ;;  %p1601_p2 = scmp.lt.s32.totalorder %s1595_s4, %s1595_s4 }
 0x192   :  { %p1602_p3 = por %p1601_p2, %p1600_p1 }
 0x193   :  { %v1435_v18 = vpop.f32.mrb[14].mxu0  ;;  %v1499_v19 = vpop.f32.mrb[14].mxu1 }
 0x194   :  { %v2123_v20 = vmul.f32 %v1499_v19, %v1435_v18  ;;  %v648_v21 = vpop.f32.mrb[15].mxu0  ;;  %v977_v22 = vpop.f32.mrb[15].mxu1  ;;  %p1603_p4 = pnand %p1602_p3, %p1596_p0 }
 0x195   :  { %v2125_v24 = vmul.f32 %v977_v22, %v648_v21 }
 0x197   :  { %v1586_v25 = vpack.c.bf16 %v2123_v20, %v2125_v24 }
 0x19b   :  { %v1438_v27 = vpop.f32.mrb[16].mxu0  ;;  %v1502_v28 = vpop.f32.mrb[16].mxu1 }
 0x19c   :  { %v1083_v30 = vmul.f32 %v1502_v28, %v1438_v27  ;;  %v658_v31 = vpop.f32.mrb[17].mxu0  ;;  %v987_v32 = vpop.f32.mrb[17].mxu1 }
 0x19d   :  { %v1082_v33 = vmul.f32 %v987_v32, %v658_v31  ;;  %v1107_v32 = vrot.slane %v1098_v13, %v1106_v16 }
 0x19f   :  { %v1556_v34 = vpack.c.bf16 %v1083_v30, %v1082_v33 }
 0x1a1   :  { %1557 = vmatprep.subr.bf16.mxu0 %v1556_v34 }
 0x1a2   :  { %1559 = vmatpush3.bf16.xpose.msra.mxu0 %v1558_v41 }
 0x1a3   :  { %v1441_v35 = vpop.f32.mrb[18].mxu0  ;;  %v1505_v37 = vpop.f32.mrb[18].mxu1 }
 0x1a4   :  { %v1085_v38 = vmul.f32 %v1505_v37, %v1441_v35  ;;  %v668_v39 = vpop.f32.mrb[19].mxu0  ;;  %v997_v40 = vpop.f32.mrb[19].mxu1 }
 0x1a5   :  { %v1084_v42 = vmul.f32 %v997_v40, %v668_v39 }
 0x1a7   :  { %v1560_v26 = vpack.c.bf16 %v1085_v38, %v1084_v42 }
 0x1a9   :  { %1561 = vmatprep.subr.bf16.mxu0 %v1560_v26 }
 0x1aa   :  { %1563 = vmatpush3.bf16.xpose.msra.mxu0 %v1562_v46 }
 0x1ab   :  { %v1444_v43 = vpop.f32.mrb[20].mxu0  ;;  %v1508_v44 = vpop.f32.mrb[20].mxu1 }
 0x1ac   :  { %v1087_v29 = vmul.f32 %v1508_v44, %v1444_v43  ;;  %v678_v45 = vpop.f32.mrb[21].mxu0  ;;  %v1007_v47 = vpop.f32.mrb[21].mxu1 }
 0x1ad   :  { %v1086_v48 = vmul.f32 %v1007_v47, %v678_v45 }
 0x1af   :  { %v1564_v49 = vpack.c.bf16 %v1087_v29, %v1086_v48 }
 0x1b1   :  { %1565 = vmatprep.subr.bf16.mxu0 %v1564_v49 }
 0x1b2   :  { %1567 = vmatpush3.bf16.xpose.msra.mxu0 %v1566_v53 }
 0x1b3   :  { %v1447_v50 = vpop.f32.mrb[22].mxu0  ;;  %v1511_v41 = vpop.f32.mrb[22].mxu1 }
 0x1b4   :  { %v1089_v51 = vmul.f32 %v1511_v41, %v1447_v50  ;;  %v688_v52 = vpop.f32.mrb[23].mxu0  ;;  %v1017_v54 = vpop.f32.mrb[23].mxu1 }
 0x1b5   :  { %v1088_v55 = vmul.f32 %v1017_v54, %v688_v52 }
 0x1b7   :  { %v1568_v57 = vpack.c.bf16 %v1089_v51, %v1088_v55 }
 0x1b9   :  { %1569 = vmatprep.subr.bf16.mxu0 %v1568_v57 }
 0x1ba   :  { %1571 = vmatpush3.bf16.xpose.msra.mxu0 %v1570_v60 }
 0x1bb   :  { %v1450_v46 = vpop.f32.mrb[24].mxu0  ;;  %v1514_v58 = vpop.f32.mrb[24].mxu1 }
 0x1bc   :  { %v1091_v61 = vmul.f32 %v1514_v58, %v1450_v46  ;;  %v698_v62 = vpop.f32.mrb[25].mxu0  ;;  %v1027_v0 = vpop.f32.mrb[25].mxu1 }
 0x1bd   :  { %v1090_v1 = vmul.f32 %v1027_v0, %v698_v62 }
 0x1bf   :  { %v1572_v4 = vpack.c.bf16 %v1091_v61, %v1090_v1 }
 0x1c1   :  { %1573 = vmatprep.subr.bf16.mxu0 %v1572_v4 }
 0x1c2   :  { %1575 = vmatpush3.bf16.xpose.msra.mxu0 %v1574_v3 }
 0x1c3   :  { %v1453_v53 = vpop.f32.mrb[26].mxu0  ;;  %v1517_v5 = vpop.f32.mrb[26].mxu1 }
 0x1c4   :  { %v1093_v7 = vmul.f32 %v1517_v5, %v1453_v53  ;;  %v708_v8 = vpop.f32.mrb[27].mxu0  ;;  %v1037_v11 = vpop.f32.mrb[27].mxu1 }
 0x1c5   :  { %v1092_v12 = vmul.f32 %v1037_v11, %v708_v8 }
 0x1c7   :  { %v1576_v56 = vpack.c.bf16 %v1093_v7, %v1092_v12 }
 0x1c9   :  { %1577 = vmatprep.subr.bf16.mxu0 %v1576_v56 }
 0x1ca   :  { %1579 = vmatpush3.bf16.xpose.msra.mxu0 %v1578_v10  ;;  %v1102_v10 = vsub.s32 0, %v1101_v9 }
 0x1cb   :  { %v1456_v59 = vpop.f32.mrb[28].mxu0  ;;  %v1520_v60 = vpop.f32.mrb[28].mxu1 }
 0x1cc   :  { %v1095_v14 = vmul.f32 %v1520_v60, %v1456_v59  ;;  %v718_v15 = vpop.f32.mrb[29].mxu0  ;;  %v1047_v18 = vpop.f32.mrb[29].mxu1  ;;  %v1103_v31 = vrot.slane %v1098_v13, %v1102_v10 }
 0x1cd   :  { %v1094_v19 = vmul.f32 %v1047_v18, %v718_v15 }
 0x1cf   :  { %v1580_v63 = vpack.c.bf16 %v1095_v14, %v1094_v19 }
 0x1d1   :  { %1581 = vmatprep.subr.bf16.mxu0 %v1580_v63 }
 0x1d2   :  { %1583 = vmatpush3.bf16.xpose.msra.mxu0 %v1582_v17  ;;  %v1622_v17 = vmov 1966171168  }
 0x1d3   :  { %v1459_v2 = vpop.f32.mrb[30].mxu0  ;;  %v1523_v3 = vpop.f32.mrb[30].mxu1  ;;  %v1185_v30 = vunpack.c.l.s4 %v1622_v17 }
 0x1d4   :  { %v1097_v21 = vmul.f32 %v1523_v3, %v1459_v2  ;;  %v728_v22 = vpop.f32.mrb[31].mxu0  ;;  %v1057_v27 = vpop.f32.mrb[31].mxu1 }
 0x1d5   :  { %v1096_v28 = vmul.f32 %v1057_v27, %v728_v22  ;;  %v1186_v33 = vunpack.c.0.s8 %v1185_v30 }
 0x1d7   :  { %v1584_v6 = vpack.c.bf16 %v1097_v21, %v1096_v28  ;;  %v1189_v24 = vsub.s32 %v1186_v33, %v1101_v9 }
 0x1d9   :  { %1585 = vmatprep.subr.bf16.mxu0 %v1584_v6 }
 0x1da   :  { %1587 = vmatpush3.bf16.xpose.msra.mxu0 %v1586_v25 }
 0x1e1   :  { %1395 = vmatmul.mubr.f32.vlgmr.msra.gmra.mrb[32].mxu0 %v1621_v36 }
 0x2b4   :  { %v1176_v34 = vpop.f32.mrb[32].mxu0 }
 0x2b5   :  { %v1177_v35 = vadd.f32 %v1176_v34, %v1103_v31  ;;  %v1178_v37 = vpop.f32.mrb[33].mxu0 }
 0x2b6   :  { %v1179_v20 = vadd.f32 %v1178_v37, %v1107_v32 }
 0x2b8   :  { %v1183_v25 = vcombine.low %v1177_v35, %v1179_v20 }
 0x2ba   :  { %v1190_v36 = vrot.slane %v1183_v25, %v1189_v24 }
 0x2bc   :  { %v1197_v38 = vrot.slane %v1190_v36, %v1189_v24 }
 0x2be   :  { %1203 = vst.msk [vmem:[#allocation2] sm:$0x3] %vm1201_vm0, %v1197_v38 }
 0x2bf   :  { %1606 = shalt.err (!%p1603_p4)
}
 0x2c0   :  { %s1607_s24 = scalar_lea.hbm %s2167_s5, 32 }
 0x2c1   :  { %p1608_p5 = scmp.ne.s32.totalorder %s2167_s5, %s1607_s24  ;;  %p1611_p6 = scmp.lt.u32.totalorder %s1607_s24, %s2167_s5 }
 0x2c3   :  { %p1613_p7 = pnand %p1611_p6, %p1608_p5 }
 0x2c5   :  { %1616 = shalt.err (!%p1613_p7)
}
 0x2c6   :  { %1213 = dma.vmem_to_hbm [thread:$0]  %s1211_s21, 32, %s2167_s5, [#allocation3]  }
 0x2c7   :  { %1617 = dma.done.wait [#allocation3], 32  }
 0x2c8   :  { %1618 = vsyncadd [#allocation3], 4294967264 }
 0x2c9   :  { %1217 = vsyncpa [#allocation3], 1 }

// kernel: tpu_custom_call.1
= control target key start
LH: loop header
LB: loop body
LE: loop exit
PB: predicated region body
PF: predicated region fallthrough
CT: control target
= control target key end

     0   :  { %v1619_v2 = vmov 0   ;;  %s2162_s0 = inlined_call_operand.vmem [shape: s32[256,1], index: 0, kind: input, shape index: {}]   ;;  %s2163_s1 = inlined_call_operand.vmem [shape: s32[256,1], index: 1, kind: input, shape index: {}]   ;;  %s2164_s2 = inlined_call_operand.vmem [shape: f32[64,128], index: 2, kind: input, shape index: {}]   ;;  %s2165_s3 = inlined_call_operand.vmem [shape: f32[64,128], index: 3, kind: input, shape index: {}]   ;;  %s2166_s4 = inlined_call_operand.vmem [shape: f32[1,256], index: 4, kind: input, shape index: {}]   ;;  %s2167_s5 = inlined_call_operand.hbm [shape: f32[1,256], index: 5, kind: output, shape index: {}]  }
   0x1   :  { %v22_v0 = vld [vmem:[%s2162_s0 + $0x8] sm:$0xff]  ;;  %v21_v1 = vld [vmem:[%s2162_s0] sm:$0xff]  ;;  %1594 = vset.pattern.permute.xlu1 %v1619_v2  ;;  %1593 = vset.pattern.permute.xlu0 %v1619_v2  ;;  %v55_v5 = vld [vmem:[%s2163_s1 + $0x10] sm:$0xff] }
   0x2   :  { %91 = vperm.xlu1 %1594, %v22_v0   ;;  %88 = vperm.xlu0 %1593, %v21_v1   ;;  %v54_v3 = vld [vmem:[%s2163_s1 + $0x8] sm:$0xff]  ;;  %v53_v4 = vld [vmem:[%s2163_s1] sm:$0xff]  ;;  %v23_v6 = vld [vmem:[%s2162_s0 + $0x10] sm:$0xff] }
   0x3   :  { %v56_v7 = vld [vmem:[%s2163_s1 + $0x18] sm:$0xff]  ;;  %v57_v9 = vld [vmem:[%s2163_s1 + $0x20] sm:$0xff]  ;;  %v58_v11 = vld [vmem:[%s2163_s1 + $0x28] sm:$0xff] }
   0x4   :  { %v24_v8 = vld [vmem:[%s2162_s0 + $0x18] sm:$0xff]  ;;  %v25_v10 = vld [vmem:[%s2162_s0 + $0x20] sm:$0xff]  ;;  %v26_v12 = vld [vmem:[%s2162_s0 + $0x28] sm:$0xff] }
   0x5   :  { %v407_v13 = vld [vmem:[%s2164_s2] sm:$0xff]  ;;  %v408_v14 = vld [vmem:[%s2164_s2 + $0x8] sm:$0xff]  ;;  %v409_v16 = vld [vmem:[%s2164_s2 + $0x10] sm:$0xff] }
   0x6   :  { %251 = vperm.xlu1 %1594, %v54_v3   ;;  %248 = vperm.xlu0 %1593, %v53_v4   ;;  %v1524_v15 = vpack.c.bf16 %v408_v14, %v407_v13  ;;  %v410_v17 = vld [vmem:[%s2164_s2 + $0x18] sm:$0xff]  ;;  %v737_v18 = vld [vmem:[%s2165_s3] sm:$0xff]  ;;  %v738_v19 = vld [vmem:[%s2165_s3 + $0x8] sm:$0xff] }
   0x7   :  { %v59_v20 = vld [vmem:[%s2163_s1 + $0x30] sm:$0xff]  ;;  %v1528_v22 = vpack.c.bf16 %v410_v17, %v409_v16  ;;  %v1540_v23 = vpack.c.bf16 %v738_v19, %v737_v18  ;;  %v411_v24 = vld [vmem:[%s2164_s2 + $0x20] sm:$0xff]  ;;  %v412_v25 = vld [vmem:[%s2164_s2 + $0x28] sm:$0xff] }
   0x8   :  { %v27_v21 = vld [vmem:[%s2162_s0 + $0x30] sm:$0xff]  ;;  %1525 = vmatprep.subr.bf16.mxu0 %v1524_v15  ;;  %v740_v27 = vld [vmem:[%s2165_s3 + $0x18] sm:$0xff]  ;;  %v1532_v29 = vpack.c.bf16 %v412_v25, %v411_v24  ;;  %v741_v30 = vld [vmem:[%s2165_s3 + $0x20] sm:$0xff] }
   0x9   :  { %v739_v26 = vld [vmem:[%s2165_s3 + $0x10] sm:$0xff]  ;;  %1527 = vmatpush3.bf16.msra.mxu0 %v1524_v15  ;;  %1541 = vmatprep.subr.bf16.mxu1 %v1540_v23  ;;  %v742_v31 = vld [vmem:[%s2165_s3 + $0x28] sm:$0xff]  ;;  %v414_v33 = vld [vmem:[%s2164_s2 + $0x38] sm:$0xff] }
   0xa   :  { %254 = vperm.xlu1 %1594, %v55_v5   ;;  %94 = vperm.xlu0 %1593, %v23_v6   ;;  %v1544_v28 = vpack.c.bf16 %v740_v27, %v739_v26  ;;  %v413_v32 = vld [vmem:[%s2164_s2 + $0x30] sm:$0xff] }
   0xb   :  { %1529 = vmatprep.subr.bf16.mxu0 %v1528_v22  ;;  %1543 = vmatpush3.bf16.msra.mxu1 %v1540_v23 }
   0xe   :  { %257 = vperm.xlu1 %1594, %v56_v7   ;;  %97 = vperm.xlu0 %1593, %v24_v8  }
  0x12   :  { %260 = vperm.xlu1 %1594, %v57_v9   ;;  %100 = vperm.xlu0 %1593, %v25_v10  }
  0x16   :  { %263 = vperm.xlu1 %1594, %v58_v11   ;;  %103 = vperm.xlu0 %1593, %v26_v12  }
  0x1a   :  { %266 = vperm.xlu1 %1594, %v59_v20   ;;  %106 = vperm.xlu0 %1593, %v27_v21  }
  0x1b   :  { %10 = vsyncpa [#allocation3], 0  ;;  %v60_v34 = vld [vmem:[%s2163_s1 + $0x38] sm:$0xff]  ;;  %1545 = vmatprep.subr.bf16.mxu1 %v1544_v28  ;;  %v1548_v36 = vpack.c.bf16 %v742_v31, %v741_v30  ;;  %1531 = vmatpush3.bf16.msra.mxu0 %v1528_v22  ;;  %v743_v37 = vld [vmem:[%s2165_s3 + $0x30] sm:$0xff]  ;;  %v1536_v39 = vpack.c.bf16 %v414_v33, %v413_v32  ;;  %v85_v23 = vlaneseq  ;;  %vm415_vm0 = vcmask 523264   ;;  %s1623_s20 = smov [#allocation2]  }
  0x1c   :  { %v28_v35 = vld [vmem:[%s2162_s0 + $0x38] sm:$0xff]  ;;  %1533 = vmatprep.subr.bf16.mxu0 %v1532_v29  ;;  %1547 = vmatpush3.bf16.msra.mxu1 %v1544_v28  ;;  %v61_v40 = vld [vmem:[%s2163_s1 + $0x40] sm:$0xff]  ;;  %v62_v43 = vld [vmem:[%s2163_s1 + $0x48] sm:$0xff]  ;;  %s1210_s21 = sshll.u32 %s1623_s20, 4  ;;  %s1211_s21 = int_to_ptr.vmem [resolvable:$true] %s1210_s21 }
  0x1d   :  { %v744_v38 = vld [vmem:[%s2165_s3 + $0x38] sm:$0xff]  ;;  %v29_v41 = vld [vmem:[%s2162_s0 + $0x40] sm:$0xff]  ;;  %1549 = vmatprep.subr.bf16.mxu1 %v1548_v36  ;;  %v30_v44 = vld [vmem:[%s2162_s0 + $0x48] sm:$0xff]  ;;  %v1895_v26 = vand.u32 127, %v85_v23  ;;  %p1600_p1 = scmp.lt.s32.totalorder %s1211_s21, %s1211_s21 }
  0x1e   :  { %269 = vperm.xlu1 %1594, %v60_v34   ;;  %109 = vperm.xlu0 %1593, %v28_v35   ;;  %v1552_v42 = vpack.c.bf16 %v744_v38, %v743_v37  ;;  %v63_v45 = vld [vmem:[%s2163_s1 + $0x50] sm:$0xff]  ;;  %v64_v47 = vld [vmem:[%s2163_s1 + $0x58] sm:$0xff]  ;;  %v65_v49 = vld [vmem:[%s2163_s1 + $0x60] sm:$0xff] }
  0x1f   :  { %1535 = vmatpush3.bf16.msra.mxu0 %v1532_v29  ;;  %v31_v46 = vld [vmem:[%s2162_s0 + $0x50] sm:$0xff]  ;;  %v32_v48 = vld [vmem:[%s2162_s0 + $0x58] sm:$0xff]  ;;  %v33_v50 = vld [vmem:[%s2162_s0 + $0x60] sm:$0xff]  ;;  %v1620_v29 = vmov 0.0  }
  0x20   :  { %1537 = vmatprep.subr.bf16.mxu0 %v1536_v39  ;;  %1551 = vmatpush3.bf16.msra.mxu1 %v1548_v36  ;;  %v66_v51 = vld [vmem:[%s2163_s1 + $0x68] sm:$0xff]  ;;  %v67_v53 = vld [vmem:[%s2163_s1 + $0x70] sm:$0xff]  ;;  %v68_v55 = vld [vmem:[%s2163_s1 + $0x78] sm:$0xff] }
  0x21   :  { %1553 = vmatprep.subr.bf16.mxu1 %v1552_v42  ;;  %v34_v52 = vld [vmem:[%s2162_s0 + $0x68] sm:$0xff]  ;;  %v35_v54 = vld [vmem:[%s2162_s0 + $0x70] sm:$0xff]  ;;  %v36_v56 = vld [vmem:[%s2162_s0 + $0x78] sm:$0xff] }
  0x22   :  { %272 = vperm.xlu1 %1594, %v61_v40   ;;  %112 = vperm.xlu0 %1593, %v29_v41   ;;  %v69_v57 = vld [vmem:[%s2163_s1 + $0x80] sm:$0xff]  ;;  %v70_v59 = vld [vmem:[%s2163_s1 + $0x88] sm:$0xff]  ;;  %v71_v61 = vld [vmem:[%s2163_s1 + $0x90] sm:$0xff] }
  0x23   :  { %1539 = vmatpush3.bf16.msra.mxu0 %v1536_v39  ;;  %v37_v58 = vld [vmem:[%s2162_s0 + $0x80] sm:$0xff]  ;;  %v38_v60 = vld [vmem:[%s2162_s0 + $0x88] sm:$0xff]  ;;  %v39_v62 = vld [vmem:[%s2162_s0 + $0x90] sm:$0xff] }
  0x24   :  { %1555 = vmatpush3.bf16.msra.mxu1 %v1552_v42  ;;  %v72_v63 = vld [vmem:[%s2163_s1 + $0x98] sm:$0xff]  ;;  %v73_v1 = vld [vmem:[%s2163_s1 + $0xa0] sm:$0xff]  ;;  %v74_v3 = vld [vmem:[%s2163_s1 + $0xa8] sm:$0xff] }
  0x25   :  { %v40_v0 = vld [vmem:[%s2162_s0 + $0x98] sm:$0xff]  ;;  %v41_v2 = vld [vmem:[%s2162_s0 + $0xa0] sm:$0xff]  ;;  %v42_v4 = vld [vmem:[%s2162_s0 + $0xa8] sm:$0xff] }
  0x26   :  { %275 = vperm.xlu1 %1594, %v62_v43   ;;  %115 = vperm.xlu0 %1593, %v30_v44   ;;  %v75_v5 = vld [vmem:[%s2163_s1 + $0xb0] sm:$0xff]  ;;  %v76_v7 = vld [vmem:[%s2163_s1 + $0xb8] sm:$0xff]  ;;  %v77_v9 = vld [vmem:[%s2163_s1 + $0xc0] sm:$0xff] }
  0x27   :  { %v43_v6 = vld [vmem:[%s2162_s0 + $0xb0] sm:$0xff]  ;;  %v44_v8 = vld [vmem:[%s2162_s0 + $0xb8] sm:$0xff]  ;;  %v45_v10 = vld [vmem:[%s2162_s0 + $0xc0] sm:$0xff] }
  0x28   :  { %v78_v11 = vld [vmem:[%s2163_s1 + $0xc8] sm:$0xff]  ;;  %v79_v13 = vld [vmem:[%s2163_s1 + $0xd0] sm:$0xff]  ;;  %v80_v15 = vld [vmem:[%s2163_s1 + $0xd8] sm:$0xff] }
  0x29   :  { %v46_v12 = vld [vmem:[%s2162_s0 + $0xc8] sm:$0xff]  ;;  %v47_v14 = vld [vmem:[%s2162_s0 + $0xd0] sm:$0xff]  ;;  %v48_v16 = vld [vmem:[%s2162_s0 + $0xd8] sm:$0xff] }
  0x2a   :  { %278 = vperm.xlu1 %1594, %v63_v45   ;;  %118 = vperm.xlu0 %1593, %v31_v46   ;;  %v81_v17 = vld [vmem:[%s2163_s1 + $0xe0] sm:$0xff]  ;;  %v82_v19 = vld [vmem:[%s2163_s1 + $0xe8] sm:$0xff]  ;;  %v83_v21 = vld [vmem:[%s2163_s1 + $0xf0] sm:$0xff] }
  0x2b   :  { %v49_v18 = vld [vmem:[%s2162_s0 + $0xe0] sm:$0xff]  ;;  %v50_v20 = vld [vmem:[%s2162_s0 + $0xe8] sm:$0xff]  ;;  %v51_v22 = vld [vmem:[%s2162_s0 + $0xf0] sm:$0xff] }
  0x2c   :  { %v84_v24 = vld [vmem:[%s2163_s1 + $0xf8] sm:$0xff] }
  0x2d   :  { %v52_v25 = vld [vmem:[%s2162_s0 + $0xf8] sm:$0xff] }
  0x2e   :  { %281 = vperm.xlu1 %1594, %v64_v47   ;;  %121 = vperm.xlu0 %1593, %v32_v48  }
  0x32   :  { %284 = vperm.xlu1 %1594, %v65_v49   ;;  %124 = vperm.xlu0 %1593, %v33_v50  }
  0x36   :  { %287 = vperm.xlu1 %1594, %v66_v51   ;;  %127 = vperm.xlu0 %1593, %v34_v52  }
  0x3a   :  { %290 = vperm.xlu1 %1594, %v67_v53   ;;  %130 = vperm.xlu0 %1593, %v35_v54  }
  0x3e   :  { %293 = vperm.xlu1 %1594, %v68_v55   ;;  %133 = vperm.xlu0 %1593, %v36_v56  }
  0x42   :  { %296 = vperm.xlu1 %1594, %v69_v57   ;;  %136 = vperm.xlu0 %1593, %v37_v58  }
  0x46   :  { %299 = vperm.xlu1 %1594, %v70_v59   ;;  %139 = vperm.xlu0 %1593, %v38_v60  }
  0x4a   :  { %302 = vperm.xlu1 %1594, %v71_v61   ;;  %142 = vperm.xlu0 %1593, %v39_v62  }
  0x4e   :  { %305 = vperm.xlu1 %1594, %v72_v63   ;;  %145 = vperm.xlu0 %1593, %v40_v0  }
  0x52   :  { %308 = vperm.xlu1 %1594, %v73_v1   ;;  %148 = vperm.xlu0 %1593, %v41_v2  }
  0x56   :  { %311 = vperm.xlu1 %1594, %v74_v3   ;;  %151 = vperm.xlu0 %1593, %v42_v4  }
  0x5a   :  { %314 = vperm.xlu1 %1594, %v75_v5   ;;  %154 = vperm.xlu0 %1593, %v43_v6  }
  0x5e   :  { %317 = vperm.xlu1 %1594, %v76_v7   ;;  %157 = vperm.xlu0 %1593, %v44_v8  }
  0x62   :  { %320 = vperm.xlu1 %1594, %v77_v9   ;;  %160 = vperm.xlu0 %1593, %v45_v10  }
  0x66   :  { %323 = vperm.xlu1 %1594, %v78_v11   ;;  %163 = vperm.xlu0 %1593, %v46_v12  }
  0x6a   :  { %326 = vperm.xlu1 %1594, %v79_v13   ;;  %166 = vperm.xlu0 %1593, %v47_v14  }
  0x6e   :  { %329 = vperm.xlu1 %1594, %v80_v15   ;;  %169 = vperm.xlu0 %1593, %v48_v16  }
  0x72   :  { %332 = vperm.xlu1 %1594, %v81_v17   ;;  %172 = vperm.xlu0 %1593, %v49_v18  }
  0x76   :  { %335 = vperm.xlu1 %1594, %v82_v19   ;;  %175 = vperm.xlu0 %1593, %v50_v20  }
  0x7a   :  { %338 = vperm.xlu1 %1594, %v83_v21   ;;  %178 = vperm.xlu0 %1593, %v51_v22  }
  0x7e   :  { %341 = vperm.xlu1 %1594, %v84_v24   ;;  %181 = vperm.xlu0 %1593, %v52_v25  }
  0x81   :  { %v92_v27 = vpop.permute.xlu1 %91  ;;  %v89_v28 = vpop.permute.xlu0 %88 }
  0x82   :  { %vm184_vm1 = vcmp.eq.s32.totalorder %v1895_v26, %v92_v27  ;;  %vm183_vm2 = vcmp.eq.s32.totalorder %v1895_v26, %v89_v28 }
  0x83   :  { %v216_v30 = vsel %vm184_vm1, 1.0, %v1620_v29  ;;  %v215_v31 = vsel %vm183_vm2, 1.0, %v1620_v29 }
  0x84   :  { %1412 = vmatprep.mubr.msk.f32.mxu0 %vm415_vm0, %v215_v31 }
  0x85   :  { %v252_v32 = vpop.permute.xlu1 %251  ;;  %1413 = vmatmul.mubr.msk.f32.vlgmr.msra.gmra.mrb[0].mxu0 %vm415_vm0, %v216_v30  ;;  %v249_v33 = vpop.permute.xlu0 %248 }
  0x86   :  { %vm344_vm3 = vcmp.eq.s32.totalorder %v1895_v26, %v252_v32  ;;  %vm343_vm4 = vcmp.eq.s32.totalorder %v1895_v26, %v249_v33 }
  0x87   :  { %v376_v34 = vsel %vm344_vm3, 1.0, %v1620_v29  ;;  %v375_v35 = vsel %vm343_vm4, 1.0, %v1620_v29 }
  0x88   :  { %1476 = vmatprep.mubr.msk.f32.mxu1 %vm415_vm0, %v375_v35 }
  0x89   :  { %v255_v36 = vpop.permute.xlu1 %254  ;;  %1477 = vmatmul.mubr.msk.f32.vlgmr.msra.gmra.mrb[0].mxu1 %vm415_vm0, %v376_v34  ;;  %v95_v37 = vpop.permute.xlu0 %94 }
  0x8a   :  { %vm345_vm5 = vcmp.eq.s32.totalorder %v1895_v26, %v255_v36  ;;  %vm185_vm6 = vcmp.eq.s32.totalorder %v1895_v26, %v95_v37 }
  0x8b   :  { %v377_v38 = vsel %vm345_vm5, 1.0, %v1620_v29  ;;  %v217_v39 = vsel %vm185_vm6, 1.0, %v1620_v29 }
  0x8c   :  { %1415 = vmatprep.mubr.msk.f32.mxu0 %vm415_vm0, %v217_v39  ;;  %1479 = vmatprep.mubr.msk.f32.mxu1 %vm415_vm0, %v377_v38 }
  0x8d   :  { %v258_v40 = vpop.permute.xlu1 %257  ;;  %v98_v41 = vpop.permute.xlu0 %97 }
  0x8e   :  { %vm346_vm7 = vcmp.eq.s32.totalorder %v1895_v26, %v258_v40  ;;  %vm186_vm8 = vcmp.eq.s32.totalorder %v1895_v26, %v98_v41 }
  0x8f   :  { %v378_v42 = vsel %vm346_vm7, 1.0, %v1620_v29  ;;  %v218_v43 = vsel %vm186_vm8, 1.0, %v1620_v29 }
  0x90   :  { %1416 = vmatmul.mubr.msk.f32.gmra.mrb[2].mxu0 %vm415_vm0, %v218_v43  ;;  %1480 = vmatmul.mubr.msk.f32.gmra.mrb[2].mxu1 %vm415_vm0, %v378_v42 }
  0x91   :  { %v261_v44 = vpop.permute.xlu1 %260  ;;  %v101_v45 = vpop.permute.xlu0 %100 }
  0x92   :  { %vm347_vm9 = vcmp.eq.s32.totalorder %v1895_v26, %v261_v44  ;;  %vm187_vm10 = vcmp.eq.s32.totalorder %v1895_v26, %v101_v45 }
  0x93   :  { %v379_v46 = vsel %vm347_vm9, 1.0, %v1620_v29  ;;  %v219_v47 = vsel %vm187_vm10, 1.0, %v1620_v29 }
  0x94   :  { %1418 = vmatprep.mubr.msk.f32.mxu0 %vm415_vm0, %v219_v47  ;;  %1482 = vmatprep.mubr.msk.f32.mxu1 %vm415_vm0, %v379_v46 }
  0x95   :  { %v264_v48 = vpop.permute.xlu1 %263  ;;  %v104_v49 = vpop.permute.xlu0 %103 }
  0x96   :  { %vm348_vm11 = vcmp.eq.s32.totalorder %v1895_v26, %v264_v48  ;;  %vm188_vm12 = vcmp.eq.s32.totalorder %v1895_v26, %v104_v49 }
  0x97   :  { %v380_v50 = vsel %vm348_vm11, 1.0, %v1620_v29  ;;  %v220_v51 = vsel %vm188_vm12, 1.0, %v1620_v29 }
  0x98   :  { %1419 = vmatmul.mubr.msk.f32.gmra.mrb[4].mxu0 %vm415_vm0, %v220_v51  ;;  %1483 = vmatmul.mubr.msk.f32.gmra.mrb[4].mxu1 %vm415_vm0, %v380_v50 }
  0x99   :  { %v267_v52 = vpop.permute.xlu1 %266  ;;  %v107_v53 = vpop.permute.xlu0 %106 }
  0x9a   :  { %vm349_vm13 = vcmp.eq.s32.totalorder %v1895_v26, %v267_v52  ;;  %vm189_vm14 = vcmp.eq.s32.totalorder %v1895_v26, %v107_v53 }
  0x9b   :  { %v381_v54 = vsel %vm349_vm13, 1.0, %v1620_v29  ;;  %v221_v55 = vsel %vm189_vm14, 1.0, %v1620_v29 }
  0x9c   :  { %1421 = vmatprep.mubr.msk.f32.mxu0 %vm415_vm0, %v221_v55  ;;  %1485 = vmatprep.mubr.msk.f32.mxu1 %vm415_vm0, %v381_v54 }
  0x9d   :  { %v270_v56 = vpop.permute.xlu1 %269  ;;  %v110_v57 = vpop.permute.xlu0 %109 }
  0x9e   :  { %vm350_vm15 = vcmp.eq.s32.totalorder %v1895_v26, %v270_v56  ;;  %vm190_vm1 = vcmp.eq.s32.totalorder %v1895_v26, %v110_v57 }
  0x9f   :  { %v382_v58 = vsel %vm350_vm15, 1.0, %v1620_v29  ;;  %v222_v59 = vsel %vm190_vm1, 1.0, %v1620_v29 }
  0xa0   :  { %1422 = vmatmul.mubr.msk.f32.gmra.mrb[6].mxu0 %vm415_vm0, %v222_v59  ;;  %1486 = vmatmul.mubr.msk.f32.gmra.mrb[6].mxu1 %vm415_vm0, %v382_v58 }
  0xa1   :  { %v273_v60 = vpop.permute.xlu1 %272  ;;  %v113_v61 = vpop.permute.xlu0 %112 }
  0xa2   :  { %vm351_vm2 = vcmp.eq.s32.totalorder %v1895_v26, %v273_v60  ;;  %vm191_vm3 = vcmp.eq.s32.totalorder %v1895_v26, %v113_v61 }
  0xa3   :  { %v383_v62 = vsel %vm351_vm2, 1.0, %v1620_v29  ;;  %v223_v63 = vsel %vm191_vm3, 1.0, %v1620_v29 }
  0xa4   :  { %1424 = vmatprep.mubr.msk.f32.mxu0 %vm415_vm0, %v223_v63  ;;  %1488 = vmatprep.mubr.msk.f32.mxu1 %vm415_vm0, %v383_v62 }
  0xa5   :  { %v276_v0 = vpop.permute.xlu1 %275  ;;  %v116_v1 = vpop.permute.xlu0 %115 }
  0xa6   :  { %vm352_vm4 = vcmp.eq.s32.totalorder %v1895_v26, %v276_v0  ;;  %vm192_vm5 = vcmp.eq.s32.totalorder %v1895_v26, %v116_v1 }
  0xa7   :  { %v384_v2 = vsel %vm352_vm4, 1.0, %v1620_v29  ;;  %v224_v3 = vsel %vm192_vm5, 1.0, %v1620_v29 }
  0xa8   :  { %1425 = vmatmul.mubr.msk.f32.gmra.mrb[8].mxu0 %vm415_vm0, %v224_v3  ;;  %1489 = vmatmul.mubr.msk.f32.gmra.mrb[8].mxu1 %vm415_vm0, %v384_v2 }
  0xa9   :  { %v279_v4 = vpop.permute.xlu1 %278  ;;  %v119_v5 = vpop.permute.xlu0 %118 }
  0xaa   :  { %vm353_vm6 = vcmp.eq.s32.totalorder %v1895_v26, %v279_v4  ;;  %vm193_vm7 = vcmp.eq.s32.totalorder %v1895_v26, %v119_v5 }
  0xab   :  { %v385_v6 = vsel %vm353_vm6, 1.0, %v1620_v29  ;;  %v225_v7 = vsel %vm193_vm7, 1.0, %v1620_v29 }
  0xac   :  { %1427 = vmatprep.mubr.msk.f32.mxu0 %vm415_vm0, %v225_v7  ;;  %1491 = vmatprep.mubr.msk.f32.mxu1 %vm415_vm0, %v385_v6 }
  0xad   :  { %v282_v8 = vpop.permute.xlu1 %281  ;;  %v122_v9 = vpop.permute.xlu0 %121 }
  0xae   :  { %vm354_vm8 = vcmp.eq.s32.totalorder %v1895_v26, %v282_v8  ;;  %vm194_vm9 = vcmp.eq.s32.totalorder %v1895_v26, %v122_v9 }
  0xaf   :  { %v386_v10 = vsel %vm354_vm8, 1.0, %v1620_v29  ;;  %v226_v11 = vsel %vm194_vm9, 1.0, %v1620_v29 }
  0xb0   :  { %1428 = vmatmul.mubr.msk.f32.gmra.mrb[10].mxu0 %vm415_vm0, %v226_v11  ;;  %1492 = vmatmul.mubr.msk.f32.gmra.mrb[10].mxu1 %vm415_vm0, %v386_v10 }
  0xb1   :  { %v285_v12 = vpop.permute.xlu1 %284  ;;  %v125_v13 = vpop.permute.xlu0 %124 }
  0xb2   :  { %vm355_vm10 = vcmp.eq.s32.totalorder %v1895_v26, %v285_v12  ;;  %vm195_vm11 = vcmp.eq.s32.totalorder %v1895_v26, %v125_v13 }
  0xb3   :  { %v387_v14 = vsel %vm355_vm10, 1.0, %v1620_v29  ;;  %v227_v15 = vsel %vm195_vm11, 1.0, %v1620_v29 }
  0xb4   :  { %1430 = vmatprep.mubr.msk.f32.mxu0 %vm415_vm0, %v227_v15  ;;  %1494 = vmatprep.mubr.msk.f32.mxu1 %vm415_vm0, %v387_v14 }
  0xb5   :  { %v288_v16 = vpop.permute.xlu1 %287  ;;  %v128_v17 = vpop.permute.xlu0 %127 }
  0xb6   :  { %vm356_vm12 = vcmp.eq.s32.totalorder %v1895_v26, %v288_v16  ;;  %vm196_vm13 = vcmp.eq.s32.totalorder %v1895_v26, %v128_v17 }
  0xb7   :  { %v388_v18 = vsel %vm356_vm12, 1.0, %v1620_v29  ;;  %v228_v19 = vsel %vm196_vm13, 1.0, %v1620_v29 }
  0xb8   :  { %1431 = vmatmul.mubr.msk.f32.gmra.mrb[12].mxu0 %vm415_vm0, %v228_v19  ;;  %1495 = vmatmul.mubr.msk.f32.gmra.mrb[12].mxu1 %vm415_vm0, %v388_v18 }
  0xb9   :  { %v291_v20 = vpop.permute.xlu1 %290  ;;  %v131_v21 = vpop.permute.xlu0 %130 }
  0xba   :  { %vm357_vm14 = vcmp.eq.s32.totalorder %v1895_v26, %v291_v20  ;;  %vm197_vm15 = vcmp.eq.s32.totalorder %v1895_v26, %v131_v21 }
  0xbb   :  { %v389_v22 = vsel %vm357_vm14, 1.0, %v1620_v29  ;;  %v229_v24 = vsel %vm197_vm15, 1.0, %v1620_v29 }
  0xbc   :  { %1433 = vmatprep.mubr.msk.f32.mxu0 %vm415_vm0, %v229_v24  ;;  %1497 = vmatprep.mubr.msk.f32.mxu1 %vm415_vm0, %v389_v22 }
  0xbd   :  { %v294_v25 = vpop.permute.xlu1 %293  ;;  %v134_v27 = vpop.permute.xlu0 %133 }
  0xbe   :  { %vm358_vm1 = vcmp.eq.s32.totalorder %v1895_v26, %v294_v25  ;;  %vm198_vm2 = vcmp.eq.s32.totalorder %v1895_v26, %v134_v27 }
  0xbf   :  { %v390_v28 = vsel %vm358_vm1, 1.0, %v1620_v29  ;;  %v230_v30 = vsel %vm198_vm2, 1.0, %v1620_v29 }
  0xc0   :  { %1434 = vmatmul.mubr.msk.f32.gmra.mrb[14].mxu0 %vm415_vm0, %v230_v30  ;;  %1498 = vmatmul.mubr.msk.f32.gmra.mrb[14].mxu1 %vm415_vm0, %v390_v28 }
  0xc1   :  { %v297_v31 = vpop.permute.xlu1 %296  ;;  %v137_v32 = vpop.permute.xlu0 %136 }
  0xc2   :  { %vm359_vm3 = vcmp.eq.s32.totalorder %v1895_v26, %v297_v31  ;;  %vm199_vm4 = vcmp.eq.s32.totalorder %v1895_v26, %v137_v32 }
  0xc3   :  { %v391_v33 = vsel %vm359_vm3, 1.0, %v1620_v29  ;;  %v231_v34 = vsel %vm199_vm4, 1.0, %v1620_v29 }
  0xc4   :  { %1436 = vmatprep.mubr.msk.f32.mxu0 %vm415_vm0, %v231_v34  ;;  %1500 = vmatprep.mubr.msk.f32.mxu1 %vm415_vm0, %v391_v33 }
  0xc5   :  { %v300_v35 = vpop.permute.xlu1 %299  ;;  %v140_v36 = vpop.permute.xlu0 %139 }
  0xc6   :  { %vm360_vm5 = vcmp.eq.s32.totalorder %v1895_v26, %v300_v35  ;;  %vm200_vm6 = vcmp.eq.s32.totalorder %v1895_v26, %v140_v36  ;;  %v1621_v36 = vmov 1.0  }
  0xc7   :  { %v392_v37 = vsel %vm360_vm5, 1.0, %v1620_v29  ;;  %v232_v38 = vsel %vm200_vm6, 1.0, %v1620_v29 }
  0xc8   :  { %1437 = vmatmul.mubr.msk.f32.gmra.mrb[16].mxu0 %vm415_vm0, %v232_v38  ;;  %1501 = vmatmul.mubr.msk.f32.gmra.mrb[16].mxu1 %vm415_vm0, %v392_v37 }
  0xc9   :  { %v303_v39 = vpop.permute.xlu1 %302  ;;  %v143_v40 = vpop.permute.xlu0 %142 }
  0xca   :  { %vm361_vm7 = vcmp.eq.s32.totalorder %v1895_v26, %v303_v39  ;;  %vm201_vm8 = vcmp.eq.s32.totalorder %v1895_v26, %v143_v40 }
  0xcb   :  { %v393_v41 = vsel %vm361_vm7, 1.0, %v1620_v29  ;;  %v233_v42 = vsel %vm201_vm8, 1.0, %v1620_v29 }
  0xcc   :  { %1439 = vmatprep.mubr.msk.f32.mxu0 %vm415_vm0, %v233_v42  ;;  %1503 = vmatprep.mubr.msk.f32.mxu1 %vm415_vm0, %v393_v41 }
  0xcd   :  { %v306_v43 = vpop.permute.xlu1 %305  ;;  %v146_v44 = vpop.permute.xlu0 %145 }
  0xce   :  { %vm362_vm9 = vcmp.eq.s32.totalorder %v1895_v26, %v306_v43  ;;  %vm202_vm10 = vcmp.eq.s32.totalorder %v1895_v26, %v146_v44 }
  0xcf   :  { %v394_v45 = vsel %vm362_vm9, 1.0, %v1620_v29  ;;  %v234_v46 = vsel %vm202_vm10, 1.0, %v1620_v29 }
  0xd0   :  { %1440 = vmatmul.mubr.msk.f32.gmra.mrb[18].mxu0 %vm415_vm0, %v234_v46  ;;  %1504 = vmatmul.mubr.msk.f32.gmra.mrb[18].mxu1 %vm415_vm0, %v394_v45 }
  0xd1   :  { %v309_v47 = vpop.permute.xlu1 %308  ;;  %v149_v48 = vpop.permute.xlu0 %148 }
  0xd2   :  { %vm363_vm11 = vcmp.eq.s32.totalorder %v1895_v26, %v309_v47  ;;  %vm203_vm12 = vcmp.eq.s32.totalorder %v1895_v26, %v149_v48 }
  0xd3   :  { %v395_v49 = vsel %vm363_vm11, 1.0, %v1620_v29  ;;  %v235_v50 = vsel %vm203_vm12, 1.0, %v1620_v29 }
  0xd4   :  { %1442 = vmatprep.mubr.msk.f32.mxu0 %vm415_vm0, %v235_v50  ;;  %1506 = vmatprep.mubr.msk.f32.mxu1 %vm415_vm0, %v395_v49 }
  0xd5   :  { %v312_v51 = vpop.permute.xlu1 %311  ;;  %v152_v52 = vpop.permute.xlu0 %151 }
  0xd6   :  { %vm364_vm13 = vcmp.eq.s32.totalorder %v1895_v26, %v312_v51  ;;  %vm204_vm14 = vcmp.eq.s32.totalorder %v1895_v26, %v152_v52 }
  0xd7   :  { %v396_v53 = vsel %vm364_vm13, 1.0, %v1620_v29  ;;  %v236_v54 = vsel %vm204_vm14, 1.0, %v1620_v29 }
  0xd8   :  { %1443 = vmatmul.mubr.msk.f32.gmra.mrb[20].mxu0 %vm415_vm0, %v236_v54  ;;  %1507 = vmatmul.mubr.msk.f32.gmra.mrb[20].mxu1 %vm415_vm0, %v396_v53 }
  0xd9   :  { %v315_v55 = vpop.permute.xlu1 %314  ;;  %v155_v56 = vpop.permute.xlu0 %154 }
  0xda   :  { %vm365_vm15 = vcmp.eq.s32.totalorder %v1895_v26, %v315_v55  ;;  %vm205_vm1 = vcmp.eq.s32.totalorder %v1895_v26, %v155_v56 }
  0xdb   :  { %v397_v57 = vsel %vm365_vm15, 1.0, %v1620_v29  ;;  %v237_v58 = vsel %vm205_vm1, 1.0, %v1620_v29 }
  0xdc   :  { %1445 = vmatprep.mubr.msk.f32.mxu0 %vm415_vm0, %v237_v58  ;;  %1509 = vmatprep.mubr.msk.f32.mxu1 %vm415_vm0, %v397_v57 }
  0xdd   :  { %v318_v59 = vpop.permute.xlu1 %317  ;;  %v158_v60 = vpop.permute.xlu0 %157 }
  0xde   :  { %vm366_vm2 = vcmp.eq.s32.totalorder %v1895_v26, %v318_v59  ;;  %vm206_vm3 = vcmp.eq.s32.totalorder %v1895_v26, %v158_v60 }
  0xdf   :  { %v398_v61 = vsel %vm366_vm2, 1.0, %v1620_v29  ;;  %v238_v62 = vsel %vm206_vm3, 1.0, %v1620_v29 }
  0xe0   :  { %1446 = vmatmul.mubr.msk.f32.gmra.mrb[22].mxu0 %vm415_vm0, %v238_v62  ;;  %1510 = vmatmul.mubr.msk.f32.gmra.mrb[22].mxu1 %vm415_vm0, %v398_v61 }
  0xe1   :  { %v321_v63 = vpop.permute.xlu1 %320  ;;  %v161_v0 = vpop.permute.xlu0 %160 }
  0xe2   :  { %vm367_vm4 = vcmp.eq.s32.totalorder %v1895_v26, %v321_v63  ;;  %vm207_vm5 = vcmp.eq.s32.totalorder %v1895_v26, %v161_v0 }
  0xe3   :  { %v399_v1 = vsel %vm367_vm4, 1.0, %v1620_v29  ;;  %v239_v2 = vsel %vm207_vm5, 1.0, %v1620_v29 }
  0xe4   :  { %1448 = vmatprep.mubr.msk.f32.mxu0 %vm415_vm0, %v239_v2  ;;  %1512 = vmatprep.mubr.msk.f32.mxu1 %vm415_vm0, %v399_v1 }
  0xe5   :  { %v324_v3 = vpop.permute.xlu1 %323  ;;  %v164_v4 = vpop.permute.xlu0 %163 }
  0xe6   :  { %vm368_vm6 = vcmp.eq.s32.totalorder %v1895_v26, %v324_v3  ;;  %vm208_vm7 = vcmp.eq.s32.totalorder %v1895_v26, %v164_v4 }
  0xe7   :  { %v400_v5 = vsel %vm368_vm6, 1.0, %v1620_v29  ;;  %v240_v6 = vsel %vm208_vm7, 1.0, %v1620_v29 }
  0xe8   :  { %1449 = vmatmul.mubr.msk.f32.gmra.mrb[24].mxu0 %vm415_vm0, %v240_v6  ;;  %1513 = vmatmul.mubr.msk.f32.gmra.mrb[24].mxu1 %vm415_vm0, %v400_v5 }
  0xe9   :  { %v327_v7 = vpop.permute.xlu1 %326  ;;  %v167_v8 = vpop.permute.xlu0 %166 }
  0xea   :  { %vm369_vm8 = vcmp.eq.s32.totalorder %v1895_v26, %v327_v7  ;;  %vm209_vm9 = vcmp.eq.s32.totalorder %v1895_v26, %v167_v8 }
  0xeb   :  { %v401_v9 = vsel %vm369_vm8, 1.0, %v1620_v29  ;;  %v241_v10 = vsel %vm209_vm9, 1.0, %v1620_v29 }
  0xec   :  { %1451 = vmatprep.mubr.msk.f32.mxu0 %vm415_vm0, %v241_v10  ;;  %1515 = vmatprep.mubr.msk.f32.mxu1 %vm415_vm0, %v401_v9 }
  0xed   :  { %v330_v11 = vpop.permute.xlu1 %329  ;;  %v170_v12 = vpop.permute.xlu0 %169 }
  0xee   :  { %vm370_vm10 = vcmp.eq.s32.totalorder %v1895_v26, %v330_v11  ;;  %vm210_vm11 = vcmp.eq.s32.totalorder %v1895_v26, %v170_v12 }
  0xef   :  { %v402_v13 = vsel %vm370_vm10, 1.0, %v1620_v29  ;;  %v242_v14 = vsel %vm210_vm11, 1.0, %v1620_v29 }
  0xf0   :  { %1452 = vmatmul.mubr.msk.f32.gmra.mrb[26].mxu0 %vm415_vm0, %v242_v14  ;;  %1516 = vmatmul.mubr.msk.f32.gmra.mrb[26].mxu1 %vm415_vm0, %v402_v13 }
  0xf1   :  { %v333_v15 = vpop.permute.xlu1 %332  ;;  %v173_v16 = vpop.permute.xlu0 %172 }
  0xf2   :  { %vm371_vm12 = vcmp.eq.s32.totalorder %v1895_v26, %v333_v15  ;;  %vm211_vm13 = vcmp.eq.s32.totalorder %v1895_v26, %v173_v16 }
  0xf3   :  { %v403_v17 = vsel %vm371_vm12, 1.0, %v1620_v29  ;;  %v243_v18 = vsel %vm211_vm13, 1.0, %v1620_v29 }
  0xf4   :  { %1454 = vmatprep.mubr.msk.f32.mxu0 %vm415_vm0, %v243_v18  ;;  %1518 = vmatprep.mubr.msk.f32.mxu1 %vm415_vm0, %v403_v17 }
  0xf5   :  { %v336_v19 = vpop.permute.xlu1 %335  ;;  %v176_v20 = vpop.permute.xlu0 %175 }
  0xf6   :  { %vm372_vm14 = vcmp.eq.s32.totalorder %v1895_v26, %v336_v19  ;;  %vm212_vm15 = vcmp.eq.s32.totalorder %v1895_v26, %v176_v20 }
  0xf7   :  { %v404_v21 = vsel %vm372_vm14, 1.0, %v1620_v29  ;;  %v244_v22 = vsel %vm212_vm15, 1.0, %v1620_v29 }
  0xf8   :  { %1455 = vmatmul.mubr.msk.f32.gmra.mrb[28].mxu0 %vm415_vm0, %v244_v22  ;;  %1519 = vmatmul.mubr.msk.f32.gmra.mrb[28].mxu1 %vm415_vm0, %v404_v21 }
  0xf9   :  { %v339_v24 = vpop.permute.xlu1 %338  ;;  %v179_v25 = vpop.permute.xlu0 %178 }
  0xfa   :  { %vm373_vm1 = vcmp.eq.s32.totalorder %v1895_v26, %v339_v24  ;;  %vm213_vm2 = vcmp.eq.s32.totalorder %v1895_v26, %v179_v25 }
  0xfb   :  { %v405_v27 = vsel %vm373_vm1, 1.0, %v1620_v29  ;;  %v245_v28 = vsel %vm213_vm2, 1.0, %v1620_v29 }
  0xfc   :  { %1457 = vmatprep.mubr.msk.f32.mxu0 %vm415_vm0, %v245_v28  ;;  %1521 = vmatprep.mubr.msk.f32.mxu1 %vm415_vm0, %v405_v27 }
  0xfd   :  { %v342_v30 = vpop.permute.xlu1 %341  ;;  %v182_v31 = vpop.permute.xlu0 %181 }
  0xfe   :  { %vm374_vm3 = vcmp.eq.s32.totalorder %v1895_v26, %v342_v30  ;;  %vm214_vm4 = vcmp.eq.s32.totalorder %v1895_v26, %v182_v31 }
  0xff   :  { %v406_v32 = vsel %vm374_vm3, 1.0, %v1620_v29  ;;  %v246_v33 = vsel %vm214_vm4, 1.0, %v1620_v29 }
 0x100   :  { %1458 = vmatmul.mubr.msk.f32.gmra.mrb[30].mxu0 %vm415_vm0, %v246_v33  ;;  %1522 = vmatmul.mubr.msk.f32.gmra.mrb[30].mxu1 %vm415_vm0, %v406_v32  ;;  %vm1201_vm0 = vcmp.lt.s32.totalorder %v85_v23, 256 }
 0x101   :  { %1394 = vmatprep.mubr.f32.mxu0 %v1621_v36 }
 0x158   :  { %v1414_v34 = vpop.f32.mrb[0].mxu0 }
 0x159   :  { %v578_v35 = vpop.f32.mrb[1].mxu0 }
 0x15c   :  { %v1478_v37 = vpop.f32.mrb[0].mxu1 }
 0x15d   :  { %v1067_v38 = vmul.f32 %v1478_v37, %v1414_v34  ;;  %v907_v39 = vpop.f32.mrb[1].mxu1 }
 0x15e   :  { %v1066_v40 = vmul.f32 %v907_v39, %v578_v35 }
 0x160   :  { %v1558_v41 = vpack.c.bf16 %v1067_v38, %v1066_v40 }
 0x163   :  { %v1417_v42 = vpop.f32.mrb[2].mxu0  ;;  %v1481_v26 = vpop.f32.mrb[2].mxu1 }
 0x164   :  { %v2090_v43 = vmul.f32 %v1481_v26, %v1417_v42  ;;  %v588_v44 = vpop.f32.mrb[3].mxu0  ;;  %v917_v29 = vpop.f32.mrb[3].mxu1 }
 0x165   :  { %v1068_v45 = vmul.f32 %v917_v29, %v588_v44 }
 0x167   :  { %v1562_v46 = vpack.c.bf16 %v2090_v43, %v1068_v45 }
 0x16b   :  { %v1420_v47 = vpop.f32.mrb[4].mxu0  ;;  %v1484_v48 = vpop.f32.mrb[4].mxu1 }
 0x16c   :  { %v2093_v49 = vmul.f32 %v1484_v48, %v1420_v47  ;;  %v598_v50 = vpop.f32.mrb[5].mxu0  ;;  %v927_v51 = vpop.f32.mrb[5].mxu1 }
 0x16d   :  { %v2095_v52 = vmul.f32 %v927_v51, %v598_v50 }
 0x16f   :  { %v1566_v53 = vpack.c.bf16 %v2093_v49, %v2095_v52 }
 0x173   :  { %v1423_v54 = vpop.f32.mrb[6].mxu0  ;;  %v1487_v55 = vpop.f32.mrb[6].mxu1 }
 0x174   :  { %v2099_v56 = vmul.f32 %v1487_v55, %v1423_v54  ;;  %v608_v57 = vpop.f32.mrb[7].mxu0  ;;  %v937_v58 = vpop.f32.mrb[7].mxu1 }
 0x175   :  { %v2101_v59 = vmul.f32 %v937_v58, %v608_v57 }
 0x177   :  { %v1570_v60 = vpack.c.bf16 %v2099_v56, %v2101_v59 }
 0x17b   :  { %v1426_v61 = vpop.f32.mrb[8].mxu0  ;;  %v1490_v62 = vpop.f32.mrb[8].mxu1 }
 0x17c   :  { %v2105_v63 = vmul.f32 %v1490_v62, %v1426_v61  ;;  %v618_v0 = vpop.f32.mrb[9].mxu0  ;;  %v947_v1 = vpop.f32.mrb[9].mxu1 }
 0x17d   :  { %v2107_v2 = vmul.f32 %v947_v1, %v618_v0 }
 0x17f   :  { %v1574_v3 = vpack.c.bf16 %v2105_v63, %v2107_v2 }
 0x183   :  { %v1429_v4 = vpop.f32.mrb[10].mxu0  ;;  %v1493_v5 = vpop.f32.mrb[10].mxu1 }
 0x184   :  { %v2111_v6 = vmul.f32 %v1493_v5, %v1429_v4  ;;  %v628_v7 = vpop.f32.mrb[11].mxu0  ;;  %v957_v8 = vpop.f32.mrb[11].mxu1 }
 0x185   :  { %v2113_v9 = vmul.f32 %v957_v8, %v628_v7 }
 0x187   :  { %v1578_v10 = vpack.c.bf16 %v2111_v6, %v2113_v9  ;;  %v1101_v9 = vshrl.u32 %v85_v23, 7 }
 0x18b   :  { %v1432_v11 = vpop.f32.mrb[12].mxu0  ;;  %v1496_v12 = vpop.f32.mrb[12].mxu1 }
 0x18c   :  { %v2117_v13 = vmul.f32 %v1496_v12, %v1432_v11  ;;  %v638_v14 = vpop.f32.mrb[13].mxu0  ;;  %v967_v15 = vpop.f32.mrb[13].mxu1 }
 0x18d   :  { %v2119_v16 = vmul.f32 %v967_v15, %v638_v14 }
 0x18f   :  { %v1582_v17 = vpack.c.bf16 %v2117_v13, %v2119_v16  ;;  %v1098_v13 = vld [vmem:[%s2166_s4] sm:$0x3]  ;;  %v1106_v16 = vsub.s32 1, %v1101_v9  ;;  %s1595_s4 = scalar_lea.vmem %s1211_s21, 32 }
 0x190   :  { %p1596_p0 = scmp.ne.s32.totalorder %s1211_s21, %s1595_s4  ;;  %p1601_p2 = scmp.lt.s32.totalorder %s1595_s4, %s1595_s4 }
 0x192   :  { %p1602_p3 = por %p1601_p2, %p1600_p1 }
 0x193   :  { %v1435_v18 = vpop.f32.mrb[14].mxu0  ;;  %v1499_v19 = vpop.f32.mrb[14].mxu1 }
 0x194   :  { %v2123_v20 = vmul.f32 %v1499_v19, %v1435_v18  ;;  %v648_v21 = vpop.f32.mrb[15].mxu0  ;;  %v977_v22 = vpop.f32.mrb[15].mxu1  ;;  %p1603_p4 = pnand %p1602_p3, %p1596_p0 }
 0x195   :  { %v2125_v24 = vmul.f32 %v977_v22, %v648_v21 }
 0x197   :  { %v1586_v25 = vpack.c.bf16 %v2123_v20, %v2125_v24 }
 0x19b   :  { %v1438_v27 = vpop.f32.mrb[16].mxu0  ;;  %v1502_v28 = vpop.f32.mrb[16].mxu1 }
 0x19c   :  { %v1083_v30 = vmul.f32 %v1502_v28, %v1438_v27  ;;  %v658_v31 = vpop.f32.mrb[17].mxu0  ;;  %v987_v32 = vpop.f32.mrb[17].mxu1 }
 0x19d   :  { %v1082_v33 = vmul.f32 %v987_v32, %v658_v31  ;;  %v1107_v32 = vrot.slane %v1098_v13, %v1106_v16 }
 0x19f   :  { %v1556_v34 = vpack.c.bf16 %v1083_v30, %v1082_v33 }
 0x1a1   :  { %1557 = vmatprep.subr.bf16.mxu0 %v1556_v34 }
 0x1a2   :  { %1559 = vmatpush3.bf16.xpose.msra.mxu0 %v1558_v41 }
 0x1a3   :  { %v1441_v35 = vpop.f32.mrb[18].mxu0  ;;  %v1505_v37 = vpop.f32.mrb[18].mxu1 }
 0x1a4   :  { %v1085_v38 = vmul.f32 %v1505_v37, %v1441_v35  ;;  %v668_v39 = vpop.f32.mrb[19].mxu0  ;;  %v997_v40 = vpop.f32.mrb[19].mxu1 }
 0x1a5   :  { %v1084_v42 = vmul.f32 %v997_v40, %v668_v39 }
 0x1a7   :  { %v1560_v26 = vpack.c.bf16 %v1085_v38, %v1084_v42 }
 0x1a9   :  { %1561 = vmatprep.subr.bf16.mxu0 %v1560_v26 }
 0x1aa   :  { %1563 = vmatpush3.bf16.xpose.msra.mxu0 %v1562_v46 }
 0x1ab   :  { %v1444_v43 = vpop.f32.mrb[20].mxu0  ;;  %v1508_v44 = vpop.f32.mrb[20].mxu1 }
 0x1ac   :  { %v1087_v29 = vmul.f32 %v1508_v44, %v1444_v43  ;;  %v678_v45 = vpop.f32.mrb[21].mxu0  ;;  %v1007_v47 = vpop.f32.mrb[21].mxu1 }
 0x1ad   :  { %v1086_v48 = vmul.f32 %v1007_v47, %v678_v45 }
 0x1af   :  { %v1564_v49 = vpack.c.bf16 %v1087_v29, %v1086_v48 }
 0x1b1   :  { %1565 = vmatprep.subr.bf16.mxu0 %v1564_v49 }
 0x1b2   :  { %1567 = vmatpush3.bf16.xpose.msra.mxu0 %v1566_v53 }
 0x1b3   :  { %v1447_v50 = vpop.f32.mrb[22].mxu0  ;;  %v1511_v41 = vpop.f32.mrb[22].mxu1 }
 0x1b4   :  { %v1089_v51 = vmul.f32 %v1511_v41, %v1447_v50  ;;  %v688_v52 = vpop.f32.mrb[23].mxu0  ;;  %v1017_v54 = vpop.f32.mrb[23].mxu1 }
 0x1b5   :  { %v1088_v55 = vmul.f32 %v1017_v54, %v688_v52 }
 0x1b7   :  { %v1568_v57 = vpack.c.bf16 %v1089_v51, %v1088_v55 }
 0x1b9   :  { %1569 = vmatprep.subr.bf16.mxu0 %v1568_v57 }
 0x1ba   :  { %1571 = vmatpush3.bf16.xpose.msra.mxu0 %v1570_v60 }
 0x1bb   :  { %v1450_v46 = vpop.f32.mrb[24].mxu0  ;;  %v1514_v58 = vpop.f32.mrb[24].mxu1 }
 0x1bc   :  { %v1091_v61 = vmul.f32 %v1514_v58, %v1450_v46  ;;  %v698_v62 = vpop.f32.mrb[25].mxu0  ;;  %v1027_v0 = vpop.f32.mrb[25].mxu1 }
 0x1bd   :  { %v1090_v1 = vmul.f32 %v1027_v0, %v698_v62 }
 0x1bf   :  { %v1572_v4 = vpack.c.bf16 %v1091_v61, %v1090_v1 }
 0x1c1   :  { %1573 = vmatprep.subr.bf16.mxu0 %v1572_v4 }
 0x1c2   :  { %1575 = vmatpush3.bf16.xpose.msra.mxu0 %v1574_v3 }
 0x1c3   :  { %v1453_v53 = vpop.f32.mrb[26].mxu0  ;;  %v1517_v5 = vpop.f32.mrb[26].mxu1 }
 0x1c4   :  { %v1093_v7 = vmul.f32 %v1517_v5, %v1453_v53  ;;  %v708_v8 = vpop.f32.mrb[27].mxu0  ;;  %v1037_v11 = vpop.f32.mrb[27].mxu1 }
 0x1c5   :  { %v1092_v12 = vmul.f32 %v1037_v11, %v708_v8 }
 0x1c7   :  { %v1576_v56 = vpack.c.bf16 %v1093_v7, %v1092_v12 }
 0x1c9   :  { %1577 = vmatprep.subr.bf16.mxu0 %v1576_v56 }
 0x1ca   :  { %1579 = vmatpush3.bf16.xpose.msra.mxu0 %v1578_v10  ;;  %v1102_v10 = vsub.s32 0, %v1101_v9 }
 0x1cb   :  { %v1456_v59 = vpop.f32.mrb[28].mxu0  ;;  %v1520_v60 = vpop.f32.mrb[28].mxu1 }
 0x1cc   :  { %v1095_v14 = vmul.f32 %v1520_v60, %v1456_v59  ;;  %v718_v15 = vpop.f32.mrb[29].mxu0  ;;  %v1047_v18 = vpop.f32.mrb[29].mxu1  ;;  %v1103_v31 = vrot.slane %v1098_v13, %v1102_v10 }
 0x1cd   :  { %v1094_v19 = vmul.f32 %v1047_v18, %v718_v15 }
 0x1cf   :  { %v1580_v63 = vpack.c.bf16 %v1095_v14, %v1094_v19 }
 0x1d1   :  { %1581 = vmatprep.subr.bf16.mxu0 %v1580_v63 }
 0x1d2   :  { %1583 = vmatpush3.bf16.xpose.msra.mxu0 %v1582_v17  ;;  %v1622_v17 = vmov 1966171168  }
 0x1d3   :  { %v1459_v2 = vpop.f32.mrb[30].mxu0  ;;  %v1523_v3 = vpop.f32.mrb[30].mxu1  ;;  %v1185_v30 = vunpack.c.l.s4 %v1622_v17 }
 0x1d4   :  { %v1097_v21 = vmul.f32 %v1523_v3, %v1459_v2  ;;  %v728_v22 = vpop.f32.mrb[31].mxu0  ;;  %v1057_v27 = vpop.f32.mrb[31].mxu1 }
 0x1d5   :  { %v1096_v28 = vmul.f32 %v1057_v27, %v728_v22  ;;  %v1186_v33 = vunpack.c.0.s8 %v1185_v30 }
 0x1d7   :  { %v1584_v6 = vpack.c.bf16 %v1097_v21, %v1096_v28  ;;  %v1189_v24 = vsub.s32 %v1186_v33, %v1101_v9 }
 0x1d9   :  { %1585 = vmatprep.subr.bf16.mxu0 %v1584_v6 }
 0x1da   :  { %1587 = vmatpush3.bf16.xpose.msra.mxu0 %v1586_v25 }
 0x1e1   :  { %1395 = vmatmul.mubr.f32.vlgmr.msra.gmra.mrb[32].mxu0 %v1621_v36 }
 0x2b4   :  { %v1176_v34 = vpop.f32.mrb[32].mxu0 }
 0x2b5   :  { %v1177_v35 = vadd.f32 %v1176_v34, %v1103_v31  ;;  %v1178_v37 = vpop.f32.mrb[33].mxu0 }
 0x2b6   :  { %v1179_v20 = vadd.f32 %v1178_v37, %v1107_v32 }
 0x2b8   :  { %v1183_v25 = vcombine.low %v1177_v35, %v1179_v20 }
 0x2ba   :  { %v1190_v36 = vrot.slane %v1183_v25, %v1189_v24 }
 0x2bc   :  { %v1197_v38 = vrot.slane %v1190_v36, %v1189_v24 }
 0x2be   :  { %1203 = vst.msk [vmem:[#allocation2] sm:$0x3] %vm1201_vm0, %v1197_v38 }
 0x2bf   :  { %1606 = shalt.err (!%p1603_p4)
}
 0x2c0   :  { %s1607_s24 = scalar_lea.hbm %s2167_s5, 32 }
 0x2c1   :  { %p1608_p5 = scmp.ne.s32.totalorder %s2167_s5, %s1607_s24  ;;  %p1611_p6 = scmp.lt.u32.totalorder %s1607_s24, %s2167_s5 }
 0x2c3   :  { %p1613_p7 = pnand %p1611_p6, %p1608_p5 }
 0x2c5   :  { %1616 = shalt.err (!%p1613_p7)
}
 0x2c6   :  { %1213 = dma.vmem_to_hbm [thread:$0]  %s1211_s21, 32, %s2167_s5, [#allocation3]  }
 0x2c7   :  { %1617 = dma.done.wait [#allocation3], 32  }
 0x2c8   :  { %1618 = vsyncadd [#allocation3], 4294967264 }
 0x2c9   :  { %1217 = vsyncpa [#allocation3], 1 }

</bundles_post_ra>
